<compile_context>
chip_gen: v5e
topology: v5e:2x2
jax: 0.10.0
libtpu: 0.0.40
codegen_flags: <defaults>
</compile_context>

<pallas_src>
import numpy as np
import jax
import jax.numpy as jnp
from jax.experimental import pallas as pl
from jax.experimental.pallas import tpu as pltpu

# ---- static configuration (consistent with the module) -------------------------
N_BLOCKS = 2
N_FEAT = 8
C_MID = N_FEAT // (N_FEAT // 4)     # CALayer hidden width (reduction = n_feat // 4)
KSIZE = 3
PAD = 1                             # kernel_size=3, stride=1, dilation=1, padding=1
BATCH, H, W = 2, 16, 16
LANES = W * N_FEAT                  # 128 -> lane index = x*C + c   (lane-dense)
NH = BATCH * H                      # 32  -> row index  = n*H + y
F32 = jnp.float32
BF16 = jnp.bfloat16


# ---- Pallas kernel --------------------------------------------------------------
def residual_group_kernel(x_ref,
                          wb1_ref, b1_ref, wb2_ref, b2_ref,
                          caw1_ref, cab1_ref, caw2_ref, cab2_ref,
                          wbf_ref, bf_ref,
                          out_ref):
    x = x_ref[...].astype(F32)                       # (NH, LANES) lane-dense

    # Image-boundary masks for the vertical taps (row = n*H + y); built once, reused
    # by all 5 convs (hoisted out of the unrolled block loop).
    row = jax.lax.broadcasted_iota(jnp.int32, (NH, LANES), 0)
    mask_up = (row % H) != 0                         # zero y-1 tap on first row of image
    mask_dn = (row % H) != (H - 1)                   # zero y+1 tap on last row of image

    def conv3x3(a, wcat, brow):
        """3x3 'same' conv in packed (NH, LANES) layout.

        a    : (NH, LANES) f32 activations, row = n*H + y, lane = x*C + c
        wcat : (3*LANES, LANES) bf16 -- the 3 vertical-tap band matrices concatenated;
               horizontal taps + x zero-padding are baked into the band structure
        brow : (LANES,) f32 bias tiled over x
        """
        up = jnp.where(mask_up, pltpu.roll(a, shift=1, axis=0), 0.0)       # a[r-1]
        dn = jnp.where(mask_dn, pltpu.roll(a, shift=NH - 1, axis=0), 0.0)  # a[r+1]
        lhs = jnp.concatenate([up, a, dn], axis=1).astype(BF16)            # (NH, 384)
        return jnp.dot(lhs, wcat, preferred_element_type=F32) + brow

    res = x
    for blk in range(N_BLOCKS):                       # static unroll (N_BLOCKS = 2)
        # conv1 + relu
        h1 = jnp.maximum(conv3x3(res, wb1_ref[blk], b1_ref[blk]), 0.0)
        # conv2
        h2 = conv3x3(h1, wb2_ref[blk], b2_ref[blk])
        # CALayer: avg-pool -> 1x1 -> relu -> 1x1 -> sigmoid -> scale.
        # avg-pool (1/(H*W)) + per-x tiling are folded into caw1/caw2 on the host;
        # the pool itself is a per-image sublane reduction (no MXU).
        h2_3d = h2.reshape(BATCH, H, LANES)
        hsum = jnp.sum(h2_3d, axis=1)                                       # (B, LANES)
        y1 = jnp.maximum(
            jnp.dot(hsum, caw1_ref[blk], preferred_element_type=F32)
            + cab1_ref[blk], 0.0)                                           # (B, C_MID)
        z = jnp.dot(y1, caw2_ref[blk], preferred_element_type=F32) + cab2_ref[blk]
        scale = jax.nn.sigmoid(z)                                           # (B, LANES)
        # block residual with per-image channel gate (in-register broadcast)
        res = res + (h2_3d * scale[:, None, :]).reshape(NH, LANES)

    # trailing group conv + group residual
    res = conv3x3(res, wbf_ref[...], bf_ref[0])
    out_ref[...] = (res + x).astype(out_ref.dtype)


# ---- wrapper-side packing (host NumPy, runs once per parameter set) --------------
def _band_conv_weights(w):
    """w: (3,3,C,C) HWIO -> (3*LANES, LANES): the 3 vertical-tap band matrices stacked.
    band[ky][xi*C + ci, xo*C + co] = w[ky, xi-xo+1, ci, co] for |xi - xo| <= 1 (else 0),
    baking the 3 horizontal taps and the x zero-padding into one matmul per ky; the three
    ky bands are concatenated so one (NH,384)@(384,128) matmul does the whole conv."""
    w = np.asarray(w, np.float32)
    bands = []
    for ky in range(KSIZE):
        acc = np.zeros((LANES, LANES), np.float32)
        for kx in range(KSIZE):
            e = np.eye(W, k=1 - kx, dtype=np.float32)   # x_in = x_out + kx - 1
            acc += np.kron(e, w[ky, kx])
        bands.append(acc)
    return np.concatenate(bands, axis=0)                # (384, 128)


def _pack_params(params):
    (w1, b1, w2, b2, caw1, cab1, caw2, cab2, wf, bf) = [
        np.asarray(p, np.float32) for p in params]
    wb1 = np.stack([_band_conv_weights(w1[b]) for b in range(N_BLOCKS)])   # (NB,384,128)
    wb2 = np.stack([_band_conv_weights(w2[b]) for b in range(N_BLOCKS)])
    wbf = _band_conv_weights(wf)                                            # (384,128)
    b1r = np.tile(b1, (1, W))                                               # (NB,128)
    b2r = np.tile(b2, (1, W))
    bfr = np.tile(bf, (1, W))                                               # (1,128)
    # avg-pool (1/(H*W)) + per-x tiling folded into the first CA 1x1 conv weight
    caw1p = np.stack([np.tile(caw1[b], (W, 1)) for b in range(N_BLOCKS)]) / float(H * W)
    # per-x tiling folded into the second CA 1x1 conv weight / bias
    caw2p = np.stack([np.tile(caw2[b], (1, W)) for b in range(N_BLOCKS)])
    cab2r = np.tile(cab2, (1, W))                                           # (NB,128)
    # conv band weights feed the MXU -> bf16; everything else stays f32.
    return (jnp.asarray(wb1, BF16), jnp.asarray(b1r),
            jnp.asarray(wb2, BF16), jnp.asarray(b2r),
            jnp.asarray(caw1p), jnp.asarray(cab1),
            jnp.asarray(caw2p), jnp.asarray(cab2r),
            jnp.asarray(wbf, BF16), jnp.asarray(bfr))


def make_residual_group(params):
    """Packs parameters once and returns a jitted forward fn: (N,C,H,W) -> (N,C,H,W)."""
    packed = _pack_params(params)            # one-time host packing, cached via closure

    @jax.jit
    def run(x_nchw):
        # NCHW -> NHWC -> lane-dense (N*H, W*C) = (32, 128)
        x = jnp.transpose(x_nchw, (0, 2, 3, 1)).reshape(NH, LANES)
        vmem = pl.BlockSpec(memory_space=pltpu.MemorySpace.VMEM)
        out = pl.pallas_call(
            residual_group_kernel,
            out_shape=jax.ShapeDtypeStruct((NH, LANES), x_nchw.dtype),
            in_specs=[vmem] * (1 + len(packed)),
            out_specs=vmem,
        )(x, *packed)
        out = out.reshape(BATCH, H, W, N_FEAT)
        return jnp.transpose(out, (0, 3, 1, 2))        # -> NCHW

    return run


# ---- deterministic parameter init (synthetic, not a checkpoint) -------------------
def init_params(key):
    ks = jax.random.split(key, 11)
    s_conv = 1.0 / np.sqrt(KSIZE * KSIZE * N_FEAT)
    s_ca1 = 1.0 / np.sqrt(N_FEAT)
    s_ca2 = 1.0 / np.sqrt(C_MID)
    w1 = jax.random.normal(ks[0], (N_BLOCKS, KSIZE, KSIZE, N_FEAT, N_FEAT), F32) * s_conv
    b1 = jax.random.normal(ks[1], (N_BLOCKS, N_FEAT), F32) * s_conv
    w2 = jax.random.normal(ks[2], (N_BLOCKS, KSIZE, KSIZE, N_FEAT, N_FEAT), F32) * s_conv
    b2 = jax.random.normal(ks[3], (N_BLOCKS, N_FEAT), F32) * s_conv
    caw1 = jax.random.normal(ks[4], (N_BLOCKS, N_FEAT, C_MID), F32) * s_ca1
    cab1 = jax.random.normal(ks[5], (N_BLOCKS, C_MID), F32) * s_ca1
    caw2 = jax.random.normal(ks[6], (N_BLOCKS, C_MID, N_FEAT), F32) * s_ca2
    cab2 = jax.random.normal(ks[7], (N_BLOCKS, N_FEAT), F32) * s_ca2
    wf = jax.random.normal(ks[8], (KSIZE, KSIZE, N_FEAT, N_FEAT), F32) * s_conv
    bf = jax.random.normal(ks[9], (1, N_FEAT), F32) * s_conv
    return (w1, b1, w2, b2, caw1, cab1, caw2, cab2, wf, bf)


# ---- pure-JAX reference (sanity check) --------------------------------------------
def _conv3x3_ref(x, w, b):
    return jax.lax.conv_general_dilated(
        x, w, window_strides=(1, 1), padding=((PAD, PAD), (PAD, PAD)),
        dimension_numbers=("NHWC", "HWIO", "NHWC")) + b[None, None, None, :]


def residual_group_ref(x_nchw, params):
    (w1, b1, w2, b2, caw1, cab1, caw2, cab2, wf, bf) = params
    x = jnp.transpose(x_nchw, (0, 2, 3, 1))
    res = x
    for blk in range(N_BLOCKS):
        h1 = jax.nn.relu(_conv3x3_ref(res, w1[blk], b1[blk]))
        h2 = _conv3x3_ref(h1, w2[blk], b2[blk])
        y = jnp.mean(h2, axis=(1, 2))
        y = jax.nn.relu(y @ caw1[blk] + cab1[blk])
        y = jax.nn.sigmoid(y @ caw2[blk] + cab2[blk])
        res = res + h2 * y[:, None, None, :]
    res = _conv3x3_ref(res, wf, bf[0]) + x
    return jnp.transpose(res, (0, 3, 1, 2))


if __name__ == "__main__":
    key = jax.random.PRNGKey(0)
    kx, kp = jax.random.split(key)
    x = jax.random.normal(kx, (BATCH, N_FEAT, H, W), F32)   # NCHW like PyTorch
    params = init_params(kp)

    run = make_residual_group(params)     # packs weights (bf16 bands) once
    out = jax.block_until_ready(run(x))

    ref = jax.block_until_ready(residual_group_ref(x, params))
    # tolerance loosened slightly vs. the pure-f32 version: conv matmuls now use bf16
    # MXU operands (f32 accumulation), which introduces ~0.3% rounding per conv.
    np.testing.assert_allclose(np.asarray(out), np.asarray(ref), rtol=2e-2, atol=2e-2)

    print("KERNEL_OK")
</pallas_src>

<mosaic_0001>
module attributes {stable_mosaic.version = 11 : i64} {
  func.func @residual_group_kernel(%arg0: memref<32x128xf32, #tpu.memory_space<vmem>>, %arg1: memref<2x384x128xbf16, #tpu.memory_space<vmem>>, %arg2: memref<2x128xf32, #tpu.memory_space<vmem>>, %arg3: memref<2x384x128xbf16, #tpu.memory_space<vmem>>, %arg4: memref<2x128xf32, #tpu.memory_space<vmem>>, %arg5: memref<2x128x4xf32, #tpu.memory_space<vmem>>, %arg6: memref<2x4xf32, #tpu.memory_space<vmem>>, %arg7: memref<2x4x128xf32, #tpu.memory_space<vmem>>, %arg8: memref<2x128xf32, #tpu.memory_space<vmem>>, %arg9: memref<384x128xbf16, #tpu.memory_space<vmem>>, %arg10: memref<1x128xf32, #tpu.memory_space<vmem>>, %arg11: memref<32x128xf32, #tpu.memory_space<vmem>>) attributes {dimension_semantics = [], scalar_prefetch = 0 : i64, scratch_operands = 0 : i64, tpu.core_type = #tpu.core_type<tc>} {
    %c0 = arith.constant 0 : index
    %c0_0 = arith.constant 0 : index
    %0 = vector.load %arg0[%c0, %c0_0] : memref<32x128xf32, #tpu.memory_space<vmem>>, vector<32x128xf32>
    %1 = tpu.iota {dimensions = array<i32: 0>} : vector<32x128xi32>
    %c16_i32 = arith.constant 16 : i32
    %c0_i32 = arith.constant 0 : i32
    %2 = arith.cmpi eq, %c16_i32, %c0_i32 : i32
    %c1_i32 = arith.constant 1 : i32
    %3 = arith.select %2, %c1_i32, %c16_i32 : i32
    %4 = vector.broadcast %3 : i32 to vector<32x128xi32>
    %5 = arith.remsi %1, %4 : vector<32x128xi32>
    %c0_i32_1 = arith.constant 0 : i32
    %6 = vector.broadcast %c0_i32_1 : i32 to vector<32x128xi32>
    %7 = arith.cmpi ne, %5, %6 : vector<32x128xi32>
    %c0_i32_2 = arith.constant 0 : i32
    %8 = vector.broadcast %c0_i32_2 : i32 to vector<32x128xi32>
    %9 = arith.cmpi slt, %5, %8 : vector<32x128xi32>
    %c0_i32_3 = arith.constant 0 : i32
    %10 = arith.cmpi slt, %3, %c0_i32_3 : i32
    %11 = vector.broadcast %10 : i1 to vector<32x128xi1>
    %12 = vector.broadcast %11 : vector<32x128xi1> to vector<32x128xi1>
    %13 = arith.xori %9, %12 : vector<32x128xi1>
    %14 = arith.andi %13, %7 : vector<32x128xi1>
    %15 = vector.broadcast %3 : i32 to vector<32x128xi32>
    %16 = arith.addi %5, %15 : vector<32x128xi32>
    %17 = arith.select %14, %16, %5 : vector<32x128xi1>, vector<32x128xi32>
    %c0_i32_4 = arith.constant 0 : i32
    %18 = vector.broadcast %c0_i32_4 : i32 to vector<32x128xi32>
    %19 = arith.cmpi ne, %17, %18 : vector<32x128xi32>
    %c16_i32_5 = arith.constant 16 : i32
    %c0_i32_6 = arith.constant 0 : i32
    %20 = arith.cmpi eq, %c16_i32_5, %c0_i32_6 : i32
    %c1_i32_7 = arith.constant 1 : i32
    %21 = arith.select %20, %c1_i32_7, %c16_i32_5 : i32
    %22 = vector.broadcast %21 : i32 to vector<32x128xi32>
    %23 = arith.remsi %1, %22 : vector<32x128xi32>
    %c0_i32_8 = arith.constant 0 : i32
    %24 = vector.broadcast %c0_i32_8 : i32 to vector<32x128xi32>
    %25 = arith.cmpi ne, %23, %24 : vector<32x128xi32>
    %c0_i32_9 = arith.constant 0 : i32
    %26 = vector.broadcast %c0_i32_9 : i32 to vector<32x128xi32>
    %27 = arith.cmpi slt, %23, %26 : vector<32x128xi32>
    %c0_i32_10 = arith.constant 0 : i32
    %28 = arith.cmpi slt, %21, %c0_i32_10 : i32
    %29 = vector.broadcast %28 : i1 to vector<32x128xi1>
    %30 = vector.broadcast %29 : vector<32x128xi1> to vector<32x128xi1>
    %31 = arith.xori %27, %30 : vector<32x128xi1>
    %32 = arith.andi %31, %25 : vector<32x128xi1>
    %33 = vector.broadcast %21 : i32 to vector<32x128xi32>
    %34 = arith.addi %23, %33 : vector<32x128xi32>
    %35 = arith.select %32, %34, %23 : vector<32x128xi1>, vector<32x128xi32>
    %c15_i32 = arith.constant 15 : i32
    %36 = vector.broadcast %c15_i32 : i32 to vector<32x128xi32>
    %37 = arith.cmpi ne, %35, %36 : vector<32x128xi32>
    %c0_11 = arith.constant 0 : index
    %c0_12 = arith.constant 0 : index
    %c0_13 = arith.constant 0 : index
    %38 = vector.load %arg1[%c0_11, %c0_12, %c0_13] : memref<2x384x128xbf16, #tpu.memory_space<vmem>>, vector<1x384x128xbf16>
    %39 = vector.shape_cast %38 : vector<1x384x128xbf16> to vector<384x128xbf16>
    %c0_14 = arith.constant 0 : index
    %c0_15 = arith.constant 0 : index
    %40 = vector.load %arg2[%c0_14, %c0_15] : memref<2x128xf32, #tpu.memory_space<vmem>>, vector<1x128xf32>
    %41 = vector.shape_cast %40 : vector<1x128xf32> to vector<128xf32>
    %c1_i32_16 = arith.constant 1 : i32
    %42 = tpu.dynamic_rotate %0 by %c1_i32_16 dim 0 : vector<32x128xf32>, i32 -> vector<32x128xf32>
    %cst = arith.constant 0.000000e+00 : f32
    %43 = vector.broadcast %cst : f32 to vector<32x128xf32>
    %44 = arith.select %19, %42, %43 : vector<32x128xi1>, vector<32x128xf32>
    %c31_i32 = arith.constant 31 : i32
    %45 = tpu.dynamic_rotate %0 by %c31_i32 dim 0 : vector<32x128xf32>, i32 -> vector<32x128xf32>
    %cst_17 = arith.constant 0.000000e+00 : f32
    %46 = vector.broadcast %cst_17 : f32 to vector<32x128xf32>
    %47 = arith.select %37, %45, %46 : vector<32x128xi1>, vector<32x128xf32>
    %48 = tpu.concatenate %44, %0, %47 in 1 : vector<32x128xf32>, vector<32x128xf32>, vector<32x128xf32> -> vector<32x384xf32>
    %49 = arith.truncf %48 : vector<32x384xf32> to vector<32x384xbf16>
    %cst_18 = arith.constant dense<0.000000e+00> : vector<32x128xf32>
    %50 = tpu.matmul %49, %39, %cst_18 {dimension_numbers = #tpu.dot_dimension_numbers<[1], [0], [0], [1], [0, 0, 1, 1], [], []>} : vector<32x384xbf16>, vector<384x128xbf16>, vector<32x128xf32> -> vector<32x128xf32>
    %51 = vector.shape_cast %41 : vector<128xf32> to vector<1x128xf32>
    %52 = vector.broadcast %51 : vector<1x128xf32> to vector<32x128xf32>
    %53 = arith.addf %50, %52 : vector<32x128xf32>
    %cst_19 = arith.constant 0.000000e+00 : f32
    %54 = vector.broadcast %cst_19 : f32 to vector<32x128xf32>
    %55 = arith.maximumf %53, %54 : vector<32x128xf32>
    %c0_20 = arith.constant 0 : index
    %c0_21 = arith.constant 0 : index
    %c0_22 = arith.constant 0 : index
    %56 = vector.load %arg3[%c0_20, %c0_21, %c0_22] : memref<2x384x128xbf16, #tpu.memory_space<vmem>>, vector<1x384x128xbf16>
    %57 = vector.shape_cast %56 : vector<1x384x128xbf16> to vector<384x128xbf16>
    %c0_23 = arith.constant 0 : index
    %c0_24 = arith.constant 0 : index
    %58 = vector.load %arg4[%c0_23, %c0_24] : memref<2x128xf32, #tpu.memory_space<vmem>>, vector<1x128xf32>
    %59 = vector.shape_cast %58 : vector<1x128xf32> to vector<128xf32>
    %c1_i32_25 = arith.constant 1 : i32
    %60 = tpu.dynamic_rotate %55 by %c1_i32_25 dim 0 : vector<32x128xf32>, i32 -> vector<32x128xf32>
    %cst_26 = arith.constant 0.000000e+00 : f32
    %61 = vector.broadcast %cst_26 : f32 to vector<32x128xf32>
    %62 = arith.select %19, %60, %61 : vector<32x128xi1>, vector<32x128xf32>
    %c31_i32_27 = arith.constant 31 : i32
    %63 = tpu.dynamic_rotate %55 by %c31_i32_27 dim 0 : vector<32x128xf32>, i32 -> vector<32x128xf32>
    %cst_28 = arith.constant 0.000000e+00 : f32
    %64 = vector.broadcast %cst_28 : f32 to vector<32x128xf32>
    %65 = arith.select %37, %63, %64 : vector<32x128xi1>, vector<32x128xf32>
    %66 = tpu.concatenate %62, %55, %65 in 1 : vector<32x128xf32>, vector<32x128xf32>, vector<32x128xf32> -> vector<32x384xf32>
    %67 = arith.truncf %66 : vector<32x384xf32> to vector<32x384xbf16>
    %cst_29 = arith.constant dense<0.000000e+00> : vector<32x128xf32>
    %68 = tpu.matmul %67, %57, %cst_29 {dimension_numbers = #tpu.dot_dimension_numbers<[1], [0], [0], [1], [0, 0, 1, 1], [], []>} : vector<32x384xbf16>, vector<384x128xbf16>, vector<32x128xf32> -> vector<32x128xf32>
    %69 = vector.shape_cast %59 : vector<128xf32> to vector<1x128xf32>
    %70 = vector.broadcast %69 : vector<1x128xf32> to vector<32x128xf32>
    %71 = arith.addf %68, %70 : vector<32x128xf32>
    %72 = vector.shape_cast %71 : vector<32x128xf32> to vector<2x16x128xf32>
    %cst_30 = arith.constant dense<0.000000e+00> : vector<2x128xf32>
    %73 = vector.multi_reduction <add>, %72, %cst_30 [1] : vector<2x16x128xf32> to vector<2x128xf32>
    %c0_31 = arith.constant 0 : index
    %c0_32 = arith.constant 0 : index
    %c0_33 = arith.constant 0 : index
    %74 = vector.load %arg5[%c0_31, %c0_32, %c0_33] : memref<2x128x4xf32, #tpu.memory_space<vmem>>, vector<1x128x4xf32>
    %75 = vector.shape_cast %74 : vector<1x128x4xf32> to vector<128x4xf32>
    %cst_34 = arith.constant dense<0.000000e+00> : vector<2x4xf32>
    %76 = tpu.matmul %73, %75, %cst_34 {dimension_numbers = #tpu.dot_dimension_numbers<[1], [0], [0], [1], [0, 0, 1, 1], [], []>} : vector<2x128xf32>, vector<128x4xf32>, vector<2x4xf32> -> vector<2x4xf32>
    %c0_35 = arith.constant 0 : index
    %c0_36 = arith.constant 0 : index
    %77 = vector.load %arg6[%c0_35, %c0_36] : memref<2x4xf32, #tpu.memory_space<vmem>>, vector<1x4xf32>
    %78 = vector.shape_cast %77 : vector<1x4xf32> to vector<4xf32>
    %79 = vector.shape_cast %78 : vector<4xf32> to vector<1x4xf32>
    %80 = vector.broadcast %79 : vector<1x4xf32> to vector<2x4xf32>
    %81 = arith.addf %76, %80 : vector<2x4xf32>
    %cst_37 = arith.constant 0.000000e+00 : f32
    %82 = vector.broadcast %cst_37 : f32 to vector<2x4xf32>
    %83 = arith.maximumf %81, %82 : vector<2x4xf32>
    %c0_38 = arith.constant 0 : index
    %c0_39 = arith.constant 0 : index
    %c0_40 = arith.constant 0 : index
    %84 = vector.load %arg7[%c0_38, %c0_39, %c0_40] : memref<2x4x128xf32, #tpu.memory_space<vmem>>, vector<1x4x128xf32>
    %85 = vector.shape_cast %84 : vector<1x4x128xf32> to vector<4x128xf32>
    %cst_41 = arith.constant dense<0.000000e+00> : vector<2x128xf32>
    %86 = tpu.matmul %83, %85, %cst_41 {dimension_numbers = #tpu.dot_dimension_numbers<[1], [0], [0], [1], [0, 0, 1, 1], [], []>} : vector<2x4xf32>, vector<4x128xf32>, vector<2x128xf32> -> vector<2x128xf32>
    %c0_42 = arith.constant 0 : index
    %c0_43 = arith.constant 0 : index
    %87 = vector.load %arg8[%c0_42, %c0_43] : memref<2x128xf32, #tpu.memory_space<vmem>>, vector<1x128xf32>
    %88 = vector.shape_cast %87 : vector<1x128xf32> to vector<128xf32>
    %89 = vector.shape_cast %88 : vector<128xf32> to vector<1x128xf32>
    %90 = vector.broadcast %89 : vector<1x128xf32> to vector<2x128xf32>
    %91 = arith.addf %86, %90 : vector<2x128xf32>
    %92 = arith.negf %91 : vector<2x128xf32>
    %93 = math.exp %92 : vector<2x128xf32>
    %cst_44 = arith.constant 1.000000e+00 : f32
    %94 = vector.broadcast %cst_44 : f32 to vector<2x128xf32>
    %95 = arith.addf %94, %93 : vector<2x128xf32>
    %96 = arith.divf %94, %95 : vector<2x128xf32>
    %97 = vector.shape_cast %96 : vector<2x128xf32> to vector<2x1x128xf32>
    %98 = vector.broadcast %97 : vector<2x1x128xf32> to vector<2x16x128xf32>
    %99 = arith.mulf %72, %98 : vector<2x16x128xf32>
    %100 = vector.shape_cast %99 : vector<2x16x128xf32> to vector<32x128xf32>
    %101 = arith.addf %0, %100 : vector<32x128xf32>
    %c1 = arith.constant 1 : index
    %c0_45 = arith.constant 0 : index
    %c0_46 = arith.constant 0 : index
    %102 = vector.load %arg1[%c1, %c0_45, %c0_46] : memref<2x384x128xbf16, #tpu.memory_space<vmem>>, vector<1x384x128xbf16>
    %103 = vector.shape_cast %102 : vector<1x384x128xbf16> to vector<384x128xbf16>
    %c1_47 = arith.constant 1 : index
    %c0_48 = arith.constant 0 : index
    %104 = vector.load %arg2[%c1_47, %c0_48] : memref<2x128xf32, #tpu.memory_space<vmem>>, vector<1x128xf32>
    %105 = vector.shape_cast %104 : vector<1x128xf32> to vector<128xf32>
    %c1_i32_49 = arith.constant 1 : i32
    %106 = tpu.dynamic_rotate %101 by %c1_i32_49 dim 0 : vector<32x128xf32>, i32 -> vector<32x128xf32>
    %cst_50 = arith.constant 0.000000e+00 : f32
    %107 = vector.broadcast %cst_50 : f32 to vector<32x128xf32>
    %108 = arith.select %19, %106, %107 : vector<32x128xi1>, vector<32x128xf32>
    %c31_i32_51 = arith.constant 31 : i32
    %109 = tpu.dynamic_rotate %101 by %c31_i32_51 dim 0 : vector<32x128xf32>, i32 -> vector<32x128xf32>
    %cst_52 = arith.constant 0.000000e+00 : f32
    %110 = vector.broadcast %cst_52 : f32 to vector<32x128xf32>
    %111 = arith.select %37, %109, %110 : vector<32x128xi1>, vector<32x128xf32>
    %112 = tpu.concatenate %108, %101, %111 in 1 : vector<32x128xf32>, vector<32x128xf32>, vector<32x128xf32> -> vector<32x384xf32>
    %113 = arith.truncf %112 : vector<32x384xf32> to vector<32x384xbf16>
    %cst_53 = arith.constant dense<0.000000e+00> : vector<32x128xf32>
    %114 = tpu.matmul %113, %103, %cst_53 {dimension_numbers = #tpu.dot_dimension_numbers<[1], [0], [0], [1], [0, 0, 1, 1], [], []>} : vector<32x384xbf16>, vector<384x128xbf16>, vector<32x128xf32> -> vector<32x128xf32>
    %115 = vector.shape_cast %105 : vector<128xf32> to vector<1x128xf32>
    %116 = vector.broadcast %115 : vector<1x128xf32> to vector<32x128xf32>
    %117 = arith.addf %114, %116 : vector<32x128xf32>
    %cst_54 = arith.constant 0.000000e+00 : f32
    %118 = vector.broadcast %cst_54 : f32 to vector<32x128xf32>
    %119 = arith.maximumf %117, %118 : vector<32x128xf32>
    %c1_55 = arith.constant 1 : index
    %c0_56 = arith.constant 0 : index
    %c0_57 = arith.constant 0 : index
    %120 = vector.load %arg3[%c1_55, %c0_56, %c0_57] : memref<2x384x128xbf16, #tpu.memory_space<vmem>>, vector<1x384x128xbf16>
    %121 = vector.shape_cast %120 : vector<1x384x128xbf16> to vector<384x128xbf16>
    %c1_58 = arith.constant 1 : index
    %c0_59 = arith.constant 0 : index
    %122 = vector.load %arg4[%c1_58, %c0_59] : memref<2x128xf32, #tpu.memory_space<vmem>>, vector<1x128xf32>
    %123 = vector.shape_cast %122 : vector<1x128xf32> to vector<128xf32>
    %c1_i32_60 = arith.constant 1 : i32
    %124 = tpu.dynamic_rotate %119 by %c1_i32_60 dim 0 : vector<32x128xf32>, i32 -> vector<32x128xf32>
    %cst_61 = arith.constant 0.000000e+00 : f32
    %125 = vector.broadcast %cst_61 : f32 to vector<32x128xf32>
    %126 = arith.select %19, %124, %125 : vector<32x128xi1>, vector<32x128xf32>
    %c31_i32_62 = arith.constant 31 : i32
    %127 = tpu.dynamic_rotate %119 by %c31_i32_62 dim 0 : vector<32x128xf32>, i32 -> vector<32x128xf32>
    %cst_63 = arith.constant 0.000000e+00 : f32
    %128 = vector.broadcast %cst_63 : f32 to vector<32x128xf32>
    %129 = arith.select %37, %127, %128 : vector<32x128xi1>, vector<32x128xf32>
    %130 = tpu.concatenate %126, %119, %129 in 1 : vector<32x128xf32>, vector<32x128xf32>, vector<32x128xf32> -> vector<32x384xf32>
    %131 = arith.truncf %130 : vector<32x384xf32> to vector<32x384xbf16>
    %cst_64 = arith.constant dense<0.000000e+00> : vector<32x128xf32>
    %132 = tpu.matmul %131, %121, %cst_64 {dimension_numbers = #tpu.dot_dimension_numbers<[1], [0], [0], [1], [0, 0, 1, 1], [], []>} : vector<32x384xbf16>, vector<384x128xbf16>, vector<32x128xf32> -> vector<32x128xf32>
    %133 = vector.shape_cast %123 : vector<128xf32> to vector<1x128xf32>
    %134 = vector.broadcast %133 : vector<1x128xf32> to vector<32x128xf32>
    %135 = arith.addf %132, %134 : vector<32x128xf32>
    %136 = vector.shape_cast %135 : vector<32x128xf32> to vector<2x16x128xf32>
    %cst_65 = arith.constant dense<0.000000e+00> : vector<2x128xf32>
    %137 = vector.multi_reduction <add>, %136, %cst_65 [1] : vector<2x16x128xf32> to vector<2x128xf32>
    %c1_66 = arith.constant 1 : index
    %c0_67 = arith.constant 0 : index
    %c0_68 = arith.constant 0 : index
    %138 = vector.load %arg5[%c1_66, %c0_67, %c0_68] : memref<2x128x4xf32, #tpu.memory_space<vmem>>, vector<1x128x4xf32>
    %139 = vector.shape_cast %138 : vector<1x128x4xf32> to vector<128x4xf32>
    %cst_69 = arith.constant dense<0.000000e+00> : vector<2x4xf32>
    %140 = tpu.matmul %137, %139, %cst_69 {dimension_numbers = #tpu.dot_dimension_numbers<[1], [0], [0], [1], [0, 0, 1, 1], [], []>} : vector<2x128xf32>, vector<128x4xf32>, vector<2x4xf32> -> vector<2x4xf32>
    %c1_70 = arith.constant 1 : index
    %c0_71 = arith.constant 0 : index
    %141 = vector.load %arg6[%c1_70, %c0_71] : memref<2x4xf32, #tpu.memory_space<vmem>>, vector<1x4xf32>
    %142 = vector.shape_cast %141 : vector<1x4xf32> to vector<4xf32>
    %143 = vector.shape_cast %142 : vector<4xf32> to vector<1x4xf32>
    %144 = vector.broadcast %143 : vector<1x4xf32> to vector<2x4xf32>
    %145 = arith.addf %140, %144 : vector<2x4xf32>
    %cst_72 = arith.constant 0.000000e+00 : f32
    %146 = vector.broadcast %cst_72 : f32 to vector<2x4xf32>
    %147 = arith.maximumf %145, %146 : vector<2x4xf32>
    %c1_73 = arith.constant 1 : index
    %c0_74 = arith.constant 0 : index
    %c0_75 = arith.constant 0 : index
    %148 = vector.load %arg7[%c1_73, %c0_74, %c0_75] : memref<2x4x128xf32, #tpu.memory_space<vmem>>, vector<1x4x128xf32>
    %149 = vector.shape_cast %148 : vector<1x4x128xf32> to vector<4x128xf32>
    %cst_76 = arith.constant dense<0.000000e+00> : vector<2x128xf32>
    %150 = tpu.matmul %147, %149, %cst_76 {dimension_numbers = #tpu.dot_dimension_numbers<[1], [0], [0], [1], [0, 0, 1, 1], [], []>} : vector<2x4xf32>, vector<4x128xf32>, vector<2x128xf32> -> vector<2x128xf32>
    %c1_77 = arith.constant 1 : index
    %c0_78 = arith.constant 0 : index
    %151 = vector.load %arg8[%c1_77, %c0_78] : memref<2x128xf32, #tpu.memory_space<vmem>>, vector<1x128xf32>
    %152 = vector.shape_cast %151 : vector<1x128xf32> to vector<128xf32>
    %153 = vector.shape_cast %152 : vector<128xf32> to vector<1x128xf32>
    %154 = vector.broadcast %153 : vector<1x128xf32> to vector<2x128xf32>
    %155 = arith.addf %150, %154 : vector<2x128xf32>
    %156 = arith.negf %155 : vector<2x128xf32>
    %157 = math.exp %156 : vector<2x128xf32>
    %cst_79 = arith.constant 1.000000e+00 : f32
    %158 = vector.broadcast %cst_79 : f32 to vector<2x128xf32>
    %159 = arith.addf %158, %157 : vector<2x128xf32>
    %160 = arith.divf %158, %159 : vector<2x128xf32>
    %161 = vector.shape_cast %160 : vector<2x128xf32> to vector<2x1x128xf32>
    %162 = vector.broadcast %161 : vector<2x1x128xf32> to vector<2x16x128xf32>
    %163 = arith.mulf %136, %162 : vector<2x16x128xf32>
    %164 = vector.shape_cast %163 : vector<2x16x128xf32> to vector<32x128xf32>
    %165 = arith.addf %101, %164 : vector<32x128xf32>
    %c0_80 = arith.constant 0 : index
    %c0_81 = arith.constant 0 : index
    %166 = vector.load %arg9[%c0_80, %c0_81] : memref<384x128xbf16, #tpu.memory_space<vmem>>, vector<384x128xbf16>
    %c0_82 = arith.constant 0 : index
    %c0_83 = arith.constant 0 : index
    %167 = vector.load %arg10[%c0_82, %c0_83] : memref<1x128xf32, #tpu.memory_space<vmem>>, vector<1x128xf32>
    %168 = vector.shape_cast %167 : vector<1x128xf32> to vector<128xf32>
    %c1_i32_84 = arith.constant 1 : i32
    %169 = tpu.dynamic_rotate %165 by %c1_i32_84 dim 0 : vector<32x128xf32>, i32 -> vector<32x128xf32>
    %cst_85 = arith.constant 0.000000e+00 : f32
    %170 = vector.broadcast %cst_85 : f32 to vector<32x128xf32>
    %171 = arith.select %19, %169, %170 : vector<32x128xi1>, vector<32x128xf32>
    %c31_i32_86 = arith.constant 31 : i32
    %172 = tpu.dynamic_rotate %165 by %c31_i32_86 dim 0 : vector<32x128xf32>, i32 -> vector<32x128xf32>
    %cst_87 = arith.constant 0.000000e+00 : f32
    %173 = vector.broadcast %cst_87 : f32 to vector<32x128xf32>
    %174 = arith.select %37, %172, %173 : vector<32x128xi1>, vector<32x128xf32>
    %175 = tpu.concatenate %171, %165, %174 in 1 : vector<32x128xf32>, vector<32x128xf32>, vector<32x128xf32> -> vector<32x384xf32>
    %176 = arith.truncf %175 : vector<32x384xf32> to vector<32x384xbf16>
    %cst_88 = arith.constant dense<0.000000e+00> : vector<32x128xf32>
    %177 = tpu.matmul %176, %166, %cst_88 {dimension_numbers = #tpu.dot_dimension_numbers<[1], [0], [0], [1], [0, 0, 1, 1], [], []>} : vector<32x384xbf16>, vector<384x128xbf16>, vector<32x128xf32> -> vector<32x128xf32>
    %178 = vector.shape_cast %168 : vector<128xf32> to vector<1x128xf32>
    %179 = vector.broadcast %178 : vector<1x128xf32> to vector<32x128xf32>
    %180 = arith.addf %177, %179 : vector<32x128xf32>
    %181 = arith.addf %180, %0 : vector<32x128xf32>
    %c0_89 = arith.constant 0 : index
    %c0_90 = arith.constant 0 : index
    %182 = vector.load %arg11[%c0_89, %c0_90] : memref<32x128xf32, #tpu.memory_space<vmem>>, vector<32x128xf32>
    tpu.vector_store %arg11[%c0_89, %c0_90], %181 {strides = array<i32>} : memref<32x128xf32, #tpu.memory_space<vmem>>, vector<32x128xf32>,
    return
  }
}

</mosaic_0001>

<bundles_post_ra>
// kernel: run.1
= control target key start
LH: loop header
LB: loop body
LE: loop exit
PB: predicated region body
PF: predicated region fallthrough
CT: control target
= control target key end

     0   :  { %16 = vsyncpa [#allocation3], 0  ;;  %s2632_s20 = smov [#allocation2]   ;;  %s2633_s22 = smov 64   ;;  %s3386_s0 = inlined_call_operand.vmem [shape: f32[32,128], index: 0, kind: input, shape index: {}]   ;;  %s3387_s1 = inlined_call_operand.vmem [shape: bf16[2,384,128], index: 1, kind: input, shape index: {}]   ;;  %s3388_s2 = inlined_call_operand.vmem [shape: f32[2,128], index: 2, kind: input, shape index: {}]   ;;  %s3389_s3 = inlined_call_operand.vmem [shape: bf16[2,384,128], index: 3, kind: input, shape index: {}]   ;;  %s3390_s4 = inlined_call_operand.vmem [shape: f32[2,128], index: 4, kind: input, shape index: {}]   ;;  %s3391_s5 = inlined_call_operand.vmem [shape: f32[2,128,4], index: 5, kind: input, shape index: {}]   ;;  %s3392_s6 = inlined_call_operand.vmem [shape: f32[2,4], index: 6, kind: input, shape index: {}]   ;;  %s3393_s7 = inlined_call_operand.vmem [shape: f32[2,4,128], index: 7, kind: input, shape index: {}]   ;;  %s3394_s8 = inlined_call_operand.vmem [shape: f32[2,128], index: 8, kind: input, shape index: {}]   ;;  %s3395_s9 = inlined_call_operand.hbm [shape: bf16[384,128], index: 9, kind: input, shape index: {}]   ;;  %s3396_s10 = inlined_call_operand.vmem [shape: f32[1,128], index: 10, kind: input, shape index: {}]   ;;  %s3397_s11 = inlined_call_operand.vmem [shape: f32[32,128], index: 11, kind: output, shape index: {}]  }
   0x1   :  { %s39_s19 = sshll.u32 %s3395_s9, 4  ;;  %s41_s21 = sshll.u32 %s2632_s20, 4  ;;  %s40_s19 = int_to_ptr.hbm [resolvable:$true] %s39_s19  ;;  %s42_s21 = int_to_ptr.vmem [resolvable:$true] %s41_s21 }
   0x2   :  { %s2634_s23 = smov 4  }
   0x3   :  { %47 = dma.hbm_to_vmem [thread:$0]  %s40_s19, 3072, %s42_s21, [#allocation3], %s2633_s22, %s2633_s22, %s2634_s23  }
   0x4   :  { %2630 = dma.done.wait [#allocation3], 3072  }
   0x5   :  { %2631 = vsyncadd [#allocation3], 4294964224  ;;  %v2460_v0 = vld [vmem:[%s3387_s1 + $0x38] sm:$0xff]  ;;  %v2459_v3 = vld [vmem:[%s3387_s1 + $0x30] sm:$0xff]  ;;  %v58_v12 = vlaneseq  ;;  %vm2635_vm4 = vmmov 1   ;;  %vm752_vm11 = vcmask 1043456  }
   0x6   :  { %v2468_v1 = vld [vmem:[%s3387_s1 + $0x78] sm:$0xff]  ;;  %345 = vmatpush.bf16.msra.mxu3 %v2460_v0  ;;  %v2467_v4 = vld [vmem:[%s3387_s1 + $0x70] sm:$0xff]  ;;  %v2458_v6 = vld [vmem:[%s3387_s1 + $0x28] sm:$0xff]  ;;  %vm721_vm12 = vcmask 1041409   ;;  %vm748_vm13 = vcmask 31744  }
   0x7   :  { %v2476_v2 = vld [vmem:[%s3387_s1 + $0xb8] sm:$0xff]  ;;  %364 = vmatpush.bf16.msra.mxu1 %v2468_v1  ;;  %v2475_v5 = vld [vmem:[%s3387_s1 + $0xb0] sm:$0xff]  ;;  %v2466_v7 = vld [vmem:[%s3387_s1 + $0x68] sm:$0xff]  ;;  %v2744_v16 = vshrl.u32 %v58_v12, 7 }
   0x8   :  { %383 = vmatpush.bf16.msra.mxu2 %v2476_v2  ;;  %v2474_v8 = vld [vmem:[%s3387_s1 + $0xa8] sm:$0xff]  ;;  %v2457_v9 = vld [vmem:[%s3387_s1 + $0x20] sm:$0xff]  ;;  %v2456_v13 = vld [vmem:[%s3387_s1 + $0x18] sm:$0xff] }
   0x9   :  { %v2465_v10 = vld [vmem:[%s3387_s1 + $0x60] sm:$0xff]  ;;  %v2464_v14 = vld [vmem:[%s3387_s1 + $0x58] sm:$0xff]  ;;  %v2455_v17 = vld [vmem:[%s3387_s1 + $0x10] sm:$0xff]  ;;  %v60_v25 = vadd.s32 8, %v2744_v16  ;;  %v67_v29 = vand.u32 15, %v2744_v16  ;;  %vm172_vm0 = vcmp.lt.s32.totalorder %v2744_v16, 1 }
   0xa   :  { %346 = vmatpush.bf16.msra.mxu3 %v2459_v3  ;;  %v2473_v11 = vld [vmem:[%s3387_s1 + $0xa0] sm:$0xff]  ;;  %v2472_v15 = vld [vmem:[%s3387_s1 + $0x98] sm:$0xff]  ;;  %v2463_v18 = vld [vmem:[%s3387_s1 + $0x50] sm:$0xff]  ;;  %vm185_vm1 = vcmp.lt.s32.totalorder %v2744_v16, 7  ;;  %v61_v50 = vadd.s32 16, %v2744_v16  ;;  %v62_v51 = vadd.s32 24, %v2744_v16 }
   0xb   :  { %365 = vmatpush.bf16.msra.mxu1 %v2467_v4  ;;  %v2471_v19 = vld [vmem:[%s3387_s1 + $0x90] sm:$0xff]  ;;  %v2492_v20 = vld [vmem:[%s3389_s3 + $0x78] sm:$0xff]  ;;  %v2761_v21 = vld [vmem:[%s3386_s0] sm:$0xff]  ;;  %v74_v37 = vand.u32 15, %v60_v25  ;;  %vm111_vm2 = vcmp.ne.s32.totalorder %v67_v29, 0 }
   0xc   :  { %384 = vmatpush.bf16.msra.mxu2 %v2475_v5  ;;  %v2766_v22 = vld [vmem:[%s3386_s0 + $0x8] sm:$0xff]  ;;  %v2771_v23 = vld [vmem:[%s3386_s0 + $0x18] sm:$0xff]  ;;  %v2776_v24 = vld [vmem:[%s3386_s0 + $0x10] sm:$0xff]  ;;  %649 = vmatpush.bf16.msra.mxu0 %v2492_v20  ;;  %v168_v30 = vrot.slane %v2761_v21, 7  ;;  %v181_v34 = vrot.slane %v2761_v21, 1  ;;  %v81_v53 = vand.u32 15, %v61_v50 }
   0xd   :  { %v2491_v26 = vld [vmem:[%s3389_s3 + $0x70] sm:$0xff]  ;;  %v2454_v27 = vld [vmem:[%s3387_s1 + $0x8] sm:$0xff]  ;;  %v169_v31 = vrot.slane %v2766_v22, 7  ;;  %v171_v32 = vrot.slane %v2771_v23, 7  ;;  %v182_v35 = vrot.slane %v2766_v22, 1  ;;  %v183_v36 = vrot.slane %v2776_v24, 1  ;;  %vm2820_vm5 = vmpackc.low %vm2635_vm4, %vm111_vm2 }
   0xe   :  { %347 = vmatpush.bf16.msra.mxu3 %v2458_v6  ;;  %v2462_v28 = vld [vmem:[%s3387_s1 + $0x48] sm:$0xff]  ;;  %v2453_v38 = vld [vmem:[%s3387_s1] sm:$0xff]  ;;  %vm116_vm3 = vcmp.ne.s32.totalorder %v74_v37, 15  ;;  %v195_v46 = vpack.c.bf16 %v2766_v22, %v2761_v21  ;;  %v170_v52 = vrot.slane %v2776_v24, 7  ;;  %v184_v54 = vrot.slane %v2771_v23, 1  ;;  %v2500_v2 = vld [vmem:[%s3389_s3 + $0xb8] sm:$0xff] }
   0xf   :  { %366 = vmatpush.bf16.msra.mxu1 %v2466_v7  ;;  %v2470_v33 = vld [vmem:[%s3387_s1 + $0x88] sm:$0xff]  ;;  %v2461_v39 = vld [vmem:[%s3387_s1 + $0x40] sm:$0xff]  ;;  %v175_v40 = vsel %vm172_vm0, %v168_v30, %v169_v31  ;;  %v176_v41 = vsel %vm172_vm0, %v171_v32, %v168_v30  ;;  %v187_v43 = vsel %vm185_vm1, %v182_v35, %v183_v36  ;;  %v188_v44 = vsel %vm185_vm1, %v181_v34, %v182_v35  ;;  %vm2825_vm6 = vmpackc.low %vm116_vm3, %vm2635_vm4 }
  0x10   :  { %385 = vmatpush.bf16.msra.mxu2 %v2474_v8  ;;  %650 = vmatpush.bf16.msra.mxu0 %v2491_v26  ;;  %v2469_v42 = vld [vmem:[%s3387_s1 + $0x80] sm:$0xff]  ;;  %v1891_v45 = vpack.c.bf16 %v175_v40, %v176_v41  ;;  %v1897_v48 = vpack.c.bf16 %v187_v43, %v188_v44  ;;  %v88_v55 = vand.u32 15, %v62_v51  ;;  %v173_v56 = vsel %vm172_vm0, %v170_v52, %v171_v32  ;;  %v2490_v1 = vld [vmem:[%s3389_s3 + $0x68] sm:$0xff]  ;;  %v2499_v4 = vld [vmem:[%s3389_s3 + $0xb0] sm:$0xff] }
  0x11   :  { %v174_v57 = vsel %vm172_vm0, %v169_v31, %v170_v52  ;;  %vm113_vm7 = vcmp.ne.s32.totalorder %v81_v53, 0  ;;  %v186_v58 = vsel %vm185_vm1, %v183_v36, %v184_v54  ;;  %v189_v59 = vsel %vm185_vm1, %v184_v54, %v181_v34  ;;  %v2489_v3 = vld [vmem:[%s3389_s3 + $0x60] sm:$0xff]  ;;  %v2488_v5 = vld [vmem:[%s3389_s3 + $0x58] sm:$0xff]  ;;  %v2498_v7 = vld [vmem:[%s3389_s3 + $0xa8] sm:$0xff] }
  0x12   :  { %348 = vmatpush.bf16.msra.mxu3 %v2457_v9  ;;  %vm118_vm8 = vcmp.ne.s32.totalorder %v88_v55, 15  ;;  %v1894_v60 = vpack.c.bf16 %v173_v56, %v174_v57  ;;  %v198_v61 = vpack.c.bf16 %v2771_v23, %v2776_v24  ;;  %vm2848_vm9 = vmpackc.low %vm2635_vm4, %vm113_vm7  ;;  %v1900_v63 = vpack.c.bf16 %v189_v59, %v186_v58  ;;  %v2484_v6 = vld [vmem:[%s3389_s3 + $0x38] sm:$0xff]  ;;  %v2487_v8 = vld [vmem:[%s3389_s3 + $0x50] sm:$0xff] }
  0x13   :  { %367 = vmatpush.bf16.msra.mxu1 %v2465_v10  ;;  %vm2853_vm10 = vmpackc.low %vm118_vm8, %vm2635_vm4  ;;  %v2483_v9 = vld [vmem:[%s3389_s3 + $0x30] sm:$0xff]  ;;  %v2497_v10 = vld [vmem:[%s3389_s3 + $0xa0] sm:$0xff] }
  0x14   :  { %386 = vmatpush.bf16.msra.mxu2 %v2473_v11  ;;  %651 = vmatpush.bf16.msra.mxu0 %v2490_v1  ;;  %v2486_v11 = vld [vmem:[%s3389_s3 + $0x48] sm:$0xff]  ;;  %v2479_v20 = vld [vmem:[%s3389_s3 + $0x10] sm:$0xff]  ;;  %v2493_v25 = vld [vmem:[%s3389_s3 + $0x80] sm:$0xff] }
  0x15   :  { %v2482_v12 = vld [vmem:[%s3389_s3 + $0x28] sm:$0xff]  ;;  %v2477_v31 = vld [vmem:[%s3389_s3] sm:$0xff]  ;;  %v2602_v0 = vld [vmem:[%s3386_s0 + $0x10] sm:$0xff] }
  0x16   :  { %349 = vmatpush.bf16.msra.mxu3 %v2456_v13  ;;  %v2496_v13 = vld [vmem:[%s3389_s3 + $0x98] sm:$0xff] }
  0x17   :  { %368 = vmatpush.bf16.msra.mxu1 %v2464_v14  ;;  %v2485_v14 = vld [vmem:[%s3389_s3 + $0x40] sm:$0xff] }
  0x18   :  { %387 = vmatpush.bf16.msra.mxu2 %v2472_v15  ;;  %652 = vmatpush.bf16.msra.mxu0 %v2489_v3  ;;  %v2481_v15 = vld [vmem:[%s3389_s3 + $0x20] sm:$0xff] }
  0x1a   :  { %350 = vmatpush.bf16.msra.mxu3 %v2455_v17  ;;  %v2495_v17 = vld [vmem:[%s3389_s3 + $0x90] sm:$0xff] }
  0x1b   :  { %369 = vmatpush.bf16.msra.mxu1 %v2463_v18  ;;  %v2480_v18 = vld [vmem:[%s3389_s3 + $0x18] sm:$0xff] }
  0x1c   :  { %388 = vmatpush.bf16.msra.mxu2 %v2471_v19  ;;  %653 = vmatpush.bf16.msra.mxu0 %v2488_v5  ;;  %v2494_v19 = vld [vmem:[%s3389_s3 + $0x88] sm:$0xff] }
  0x1e   :  { %351 = vmatpush.bf16.msra.mxu3 %v2454_v27  ;;  %v2478_v27 = vld [vmem:[%s3389_s3 + $0x8] sm:$0xff] }
  0x1f   :  { %370 = vmatpush.bf16.msra.mxu1 %v2462_v28  ;;  %v2585_v28 = vld [vmem:[%s3388_s2] ss:$0 sm:$0xff] }
  0x20   :  { %389 = vmatpush.bf16.msra.mxu2 %v2470_v33  ;;  %654 = vmatpush.bf16.msra.mxu0 %v2487_v8 }
  0x22   :  { %352 = vmatpush.bf16.msra.mxu3 %v2453_v38 }
  0x23   :  { %371 = vmatpush.bf16.msra.mxu1 %v2461_v39 }
  0x24   :  { %390 = vmatpush.bf16.msra.mxu2 %v2469_v42  ;;  %655 = vmatpush.bf16.msra.mxu0 %v2486_v11 }
  0x25   :  { %1892 = vmatmul.msk.bf16.vlgmr.msra.gmra.mxu3 %vm2820_vm5, %v1891_v45 }
  0x26   :  { %372 = vmatmul.bf16.vlgmr.msra.gmra.mxu1 %v195_v46  ;;  %630 = vmatpush.bf16.msrb.mxu3 %v2484_v6 }
  0x27   :  { %1898 = vmatmul.msk.bf16.vlgmr.msra.gmra.mxu2 %vm2825_vm6, %v1897_v48  ;;  %668 = vmatpush.bf16.msrb.mxu1 %v2500_v2 }
  0x28   :  { %656 = vmatpush.bf16.msra.mxu0 %v2485_v14 }
  0x2a   :  { %631 = vmatpush.bf16.msrb.mxu3 %v2483_v9 }
  0x2b   :  { %669 = vmatpush.bf16.msrb.mxu1 %v2499_v4 }
  0x2e   :  { %632 = vmatpush.bf16.msrb.mxu3 %v2482_v12 }
  0x2f   :  { %670 = vmatpush.bf16.msrb.mxu1 %v2498_v7 }
  0x32   :  { %633 = vmatpush.bf16.msrb.mxu3 %v2481_v15 }
  0x33   :  { %671 = vmatpush.bf16.msrb.mxu1 %v2497_v10 }
  0x35   :  { %1895 = vmatmul.msk.bf16.gmra.mxu3 %vm2848_vm9, %v1894_v60 }
  0x36   :  { %377 = vmatmul.bf16.gmra.mxu1 %v198_v61  ;;  %634 = vmatpush.bf16.msrb.mxu3 %v2480_v18 }
  0x37   :  { %1901 = vmatmul.msk.bf16.gmra.mxu2 %vm2853_vm10, %v1900_v63  ;;  %672 = vmatpush.bf16.msrb.mxu1 %v2496_v13 }
  0x3a   :  { %635 = vmatpush.bf16.msrb.mxu3 %v2479_v20  ;;  %v716_v20 = vld [vmem:[%s3391_s5 + $0x78] sm:$0xff] }
  0x3b   :  { %673 = vmatpush.bf16.msrb.mxu1 %v2495_v17 }
  0x3e   :  { %636 = vmatpush.bf16.msrb.mxu3 %v2478_v27  ;;  %v713_v27 = vld [vmem:[%s3391_s5 + $0x60] sm:$0xff] }
  0x3f   :  { %674 = vmatpush.bf16.msrb.mxu1 %v2494_v19 }
  0x42   :  { %637 = vmatpush.bf16.msrb.mxu3 %v2477_v31 }
  0x43   :  { %675 = vmatpush.bf16.msrb.mxu1 %v2493_v25  ;;  %v715_v25 = vld [vmem:[%s3391_s5 + $0x70] sm:$0xff] }
  0x46   :  { %724 = vmatpush.msra.mxu3 %v716_v20 }
  0x48   :  { %725 = vmatpush.msra.mxu3 %v715_v25 }
  0xa3   :  { %v373_v26 = vpop.f32.mrf.mxu1 }
  0xa8   :  { %v354_v29 = vpop.f32.mrf.mxu3 }
  0xa9   :  { %v355_v32 = vadd.f32 %v2585_v28, %v354_v29  ;;  %v711_v29 = vld [vmem:[%s3391_s5 + $0x50] sm:$0xff] }
  0xaa   :  { %v392_v30 = vpop.f32.mrf.mxu2 }
  0xab   :  { %v375_v33 = vpop.f32.mrf.mxu1  ;;  %v374_v34 = vadd.f32 %v373_v26, %v355_v32  ;;  %v714_v26 = vld [vmem:[%s3391_s5 + $0x68] sm:$0xff]  ;;  %v709_v32 = vld [vmem:[%s3391_s5 + $0x40] sm:$0xff] }
  0xac   :  { %726 = vmatpush.msra.mxu3 %v714_v26  ;;  %v2587_v26 = vld [vmem:[%s3392_s6] ss:$0 sm:$0xff] }
  0xad   :  { %v393_v38 = vadd.f32 %v392_v30, %v374_v34  ;;  %v710_v30 = vld [vmem:[%s3391_s5 + $0x48] sm:$0xff]  ;;  %v708_v34 = vld [vmem:[%s3391_s5 + $0x38] sm:$0xff] }
  0xae   :  { %727 = vmatpush.msra.mxu3 %v713_v27 }
  0xaf   :  { %v402_v41 = vmax.f32 %v393_v38, 0.0  ;;  %v2586_v38 = vld [vmem:[%s3390_s4] ss:$0 sm:$0xff] }
  0xb0   :  { %v356_v35 = vpop.f32.mrf.mxu3 }
  0xb1   :  { %v357_v36 = vadd.f32 %v2585_v28, %v356_v35  ;;  %v467_v55 = vrot.slane %v402_v41, 1  ;;  %v455_v5 = vrot.slane %v402_v41, 7 }
  0xb2   :  { %v394_v37 = vpop.f32.mrf.mxu2 }
  0xb3   :  { %v376_v39 = vadd.f32 %v375_v33, %v357_v36  ;;  %v378_v43 = vpop.f32.mrf.mxu1  ;;  %v707_v36 = vld [vmem:[%s3391_s5 + $0x30] sm:$0xff] }
  0xb5   :  { %v395_v40 = vadd.f32 %v394_v37, %v376_v39  ;;  %v706_v37 = vld [vmem:[%s3391_s5 + $0x28] sm:$0xff]  ;;  %v705_v39 = vld [vmem:[%s3391_s5 + $0x20] sm:$0xff] }
  0xb7   :  { %v403_v42 = vmax.f32 %v395_v40, 0.0  ;;  %v704_v40 = vld [vmem:[%s3391_s5 + $0x18] sm:$0xff] }
  0xb8   :  { %v359_v44 = vpop.f32.mrf.mxu3 }
  0xb9   :  { %v360_v45 = vadd.f32 %v2585_v28, %v359_v44  ;;  %v480_v46 = vpack.c.bf16 %v403_v42, %v402_v41  ;;  %v468_v52 = vrot.slane %v403_v42, 1  ;;  %v456_v3 = vrot.slane %v403_v42, 7  ;;  %v703_v42 = vld [vmem:[%s3391_s5 + $0x10] sm:$0xff] }
  0xba   :  { %v397_v48 = vpop.f32.mrf.mxu2 }
  0xbb   :  { %v379_v50 = vadd.f32 %v378_v43, %v360_v45  ;;  %657 = vmatmul.bf16.vlgmr.msra.gmra.mxu0 %v480_v46  ;;  %v380_v58 = vpop.f32.mrf.mxu1  ;;  %v473_v61 = vsel %vm185_vm1, %v467_v55, %v468_v52  ;;  %v461_v8 = vsel %vm172_vm0, %v455_v5, %v456_v3 }
  0xbd   :  { %v398_v51 = vadd.f32 %v397_v48, %v379_v50  ;;  %v702_v48 = vld [vmem:[%s3391_s5 + $0x8] sm:$0xff] }
  0xbf   :  { %v404_v53 = vmax.f32 %v398_v51, 0.0  ;;  %v701_v51 = vld [vmem:[%s3391_s5] sm:$0xff] }
  0xc0   :  { %v361_v54 = vpop.f32.mrf.mxu3 }
  0xc1   :  { %v469_v56 = vrot.slane %v404_v53, 1  ;;  %v362_v57 = vadd.f32 %v2585_v28, %v361_v54  ;;  %v457_v15 = vrot.slane %v404_v53, 7  ;;  %v712_v28 = vld [vmem:[%s3391_s5 + $0x58] sm:$0xff] }
  0xc2   :  { %v399_v63 = vpop.f32.mrf.mxu2  ;;  %728 = vmatpush.msra.mxu3 %v712_v28 }
  0xc3   :  { %v381_v59 = vadd.f32 %v380_v58, %v362_v57  ;;  %v472_v60 = vsel %vm185_vm1, %v468_v52, %v469_v56  ;;  %v460_v18 = vsel %vm172_vm0, %v456_v3, %v457_v15 }
  0xc4   :  { %v2005_v1 = vpack.c.bf16 %v472_v60, %v473_v61  ;;  %729 = vmatpush.msra.mxu3 %v711_v29 }
  0xc5   :  { %v400_v2 = vadd.f32 %v399_v63, %v381_v59 }
  0xc6   :  { %2006 = vmatmul.msk.bf16.vlgmr.msrb.gmra.mxu1 %vm2825_vm6, %v2005_v1  ;;  %730 = vmatpush.msra.mxu3 %v710_v30  ;;  %v2516_v30 = vld [vmem:[%s3387_s1 + $0x138] sm:$0xff] }
  0xc7   :  { %v405_v4 = vmax.f32 %v400_v2, 0.0  ;;  %1053 = vmatpush.bf16.msra.mxu1 %v2516_v30 }
  0xc8   :  { %731 = vmatpush.msra.mxu3 %v709_v32  ;;  %v2524_v32 = vld [vmem:[%s3387_s1 + $0x178] sm:$0xff] }
  0xc9   :  { %v458_v6 = vrot.slane %v405_v4, 7  ;;  %v483_v7 = vpack.c.bf16 %v405_v4, %v404_v53  ;;  %v470_v11 = vrot.slane %v405_v4, 1  ;;  %v745_v53 = vld [vmem:[%s3393_s7] sm:$0xf]  ;;  %1072 = vmatpush.bf16.msrb.mxu2 %v2524_v32 }
  0xca   :  { %732 = vmatpush.msra.mxu3 %v708_v34  ;;  %v2514_v34 = vld [vmem:[%s3387_s1 + $0x128] sm:$0xff] }
  0xcb   :  { %662 = vmatmul.bf16.gmra.mxu0 %v483_v7  ;;  %v462_v9 = vsel %vm172_vm0, %v458_v6, %v455_v5  ;;  %v471_v12 = vsel %vm185_vm1, %v469_v56, %v470_v11  ;;  %v474_v13 = vsel %vm185_vm1, %v470_v11, %v467_v55  ;;  %v459_v17 = vsel %vm172_vm0, %v457_v15, %v458_v6 }
  0xcc   :  { %v1999_v10 = vpack.c.bf16 %v461_v8, %v462_v9  ;;  %v2008_v14 = vpack.c.bf16 %v474_v13, %v471_v12  ;;  %v2002_v19 = vpack.c.bf16 %v459_v17, %v460_v18  ;;  %733 = vmatpush.msra.mxu3 %v707_v36  ;;  %v2507_v36 = vld [vmem:[%s3387_s1 + $0xf0] sm:$0xff] }
  0xce   :  { %2000 = vmatmul.msk.bf16.vlgmr.msrb.gmra.mxu3 %vm2820_vm5, %v1999_v10 }
  0xcf   :  { %734 = vmatpush.msra.mxu3 %v706_v37  ;;  %v2513_v37 = vld [vmem:[%s3387_s1 + $0x120] sm:$0xff] }
  0xd1   :  { %735 = vmatpush.msra.mxu3 %v705_v39  ;;  %v2506_v39 = vld [vmem:[%s3387_s1 + $0xe8] sm:$0xff] }
  0xd3   :  { %736 = vmatpush.msra.mxu3 %v704_v40  ;;  %v2512_v40 = vld [vmem:[%s3387_s1 + $0x118] sm:$0xff] }
  0xd5   :  { %737 = vmatpush.msra.mxu3 %v703_v42  ;;  %v2505_v42 = vld [vmem:[%s3387_s1 + $0xe0] sm:$0xff] }
  0xd6   :  { %2009 = vmatmul.msk.bf16.gmra.mxu1 %vm2853_vm10, %v2008_v14 }
  0xd7   :  { %738 = vmatpush.msra.mxu3 %v702_v48  ;;  %v2510_v48 = vld [vmem:[%s3387_s1 + $0x108] sm:$0xff] }
  0xd9   :  { %739 = vmatpush.msra.mxu3 %v701_v51  ;;  %v2519_v51 = vld [vmem:[%s3387_s1 + $0x150] sm:$0xff] }
  0xdb   :  { %2010 = vmatpush.msk.msrb.mxu3 %vm752_vm11, %v745_v53 }
  0xde   :  { %2003 = vmatmul.msk.bf16.gmra.mxu3 %vm2848_vm9, %v2002_v19 }
 0x138   :  { %v658_v31 = vpop.f32.mrf.mxu0 }
 0x140   :  { %v660_v41 = vpop.f32.mrf.mxu0 }
 0x143   :  { %v677_v33 = vpop.f32.mrf.mxu1 }
 0x148   :  { %v663_v55 = vpop.f32.mrf.mxu0 }
 0x14b   :  { %v679_v43 = vpop.f32.mrf.mxu1 }
 0x150   :  { %v665_v3 = vpop.f32.mrf.mxu0 }
 0x151   :  { %v639_v35 = vpop.f32.mrf.mxu3 }
 0x152   :  { %v640_v45 = vadd.f32 %v2586_v38, %v639_v35  ;;  %v2523_v35 = vld [vmem:[%s3387_s1 + $0x170] sm:$0xff] }
 0x153   :  { %v682_v58 = vpop.f32.mrf.mxu1  ;;  %1073 = vmatpush.bf16.msrb.mxu2 %v2523_v35 }
 0x154   :  { %v659_v52 = vadd.f32 %v658_v31, %v640_v45  ;;  %v2515_v31 = vld [vmem:[%s3387_s1 + $0x130] sm:$0xff]  ;;  %v2504_v45 = vld [vmem:[%s3387_s1 + $0xd8] sm:$0xff] }
 0x155   :  { %1054 = vmatpush.bf16.msra.mxu1 %v2515_v31 }
 0x156   :  { %v3011_v57 = vadd.f32 %v677_v33, %v659_v52  ;;  %v2508_v33 = vld [vmem:[%s3387_s1 + $0xf8] sm:$0xff]  ;;  %v2503_v52 = vld [vmem:[%s3387_s1 + $0xd0] sm:$0xff] }
 0x157   :  { %1034 = vmatpush.bf16.msrb.mxu0 %v2508_v33 }
 0x159   :  { %v641_v44 = vpop.f32.mrf.mxu3  ;;  %1055 = vmatpush.bf16.msra.mxu1 %v2514_v34 }
 0x15a   :  { %v642_v46 = vadd.f32 %v2586_v38, %v641_v44  ;;  %v2520_v44 = vld [vmem:[%s3387_s1 + $0x158] sm:$0xff] }
 0x15b   :  { %v684_v6 = vpop.f32.mrf.mxu1  ;;  %1035 = vmatpush.bf16.msrb.mxu0 %v2507_v36 }
 0x15c   :  { %v661_v50 = vadd.f32 %v660_v41, %v642_v46  ;;  %v2521_v41 = vld [vmem:[%s3387_s1 + $0x160] sm:$0xff] }
 0x15d   :  { %1056 = vmatpush.bf16.msra.mxu1 %v2513_v37  ;;  %v2588_v46 = vld [vmem:[%s3394_s8] ss:$0 sm:$0xff] }
 0x15e   :  { %v3008_v54 = vadd.f32 %v679_v43, %v661_v50  ;;  %v2511_v43 = vld [vmem:[%s3387_s1 + $0x110] sm:$0xff] }
 0x15f   :  { %1036 = vmatpush.bf16.msrb.mxu0 %v2506_v39 }
 0x160   :  { %v687_v59 = vadd.f32 %v3008_v54, %v3011_v57 }
 0x161   :  { %v644_v56 = vpop.f32.mrf.mxu3  ;;  %1057 = vmatpush.bf16.msra.mxu1 %v2512_v40 }
 0x162   :  { %v645_v60 = vadd.f32 %v2586_v38, %v644_v56  ;;  %v688_v61 = vrot.slane %v687_v59, 4  ;;  %v2509_v56 = vld [vmem:[%s3387_s1 + $0x100] sm:$0xff] }
 0x163   :  { %1037 = vmatpush.bf16.msrb.mxu0 %v2505_v42 }
 0x164   :  { %v664_v1 = vadd.f32 %v663_v55, %v645_v60  ;;  %v689_v4 = vadd.f32 %v688_v61, %v687_v59  ;;  %v2502_v59 = vld [vmem:[%s3387_s1 + $0xc8] sm:$0xff]  ;;  %v2517_v60 = vld [vmem:[%s3387_s1 + $0x140] sm:$0xff] }
 0x165   :  { %1058 = vmatpush.bf16.msra.mxu1 %v2511_v43  ;;  %v2501_v61 = vld [vmem:[%s3387_s1 + $0xc0] sm:$0xff] }
 0x166   :  { %v3015_v7 = vadd.f32 %v682_v58, %v664_v1  ;;  %v690_v9 = vrot.slane %v689_v4, 2  ;;  %v2518_v58 = vld [vmem:[%s3387_s1 + $0x148] sm:$0xff] }
 0x167   :  { %1038 = vmatpush.bf16.msrb.mxu0 %v2504_v45 }
 0x168   :  { %v691_v13 = vadd.f32 %v690_v9, %v689_v4 }
 0x169   :  { %v646_v63 = vpop.f32.mrf.mxu3  ;;  %1059 = vmatpush.bf16.msra.mxu1 %v2510_v48  ;;  %v2548_v48 = vld [vmem:[%s3389_s3 + $0x178] sm:$0xff] }
 0x16a   :  { %v647_v2 = vadd.f32 %v2586_v38, %v646_v63  ;;  %v692_v15 = vrot.slane %v691_v13, 1  ;;  %v2522_v38 = vld [vmem:[%s3387_s1 + $0x168] sm:$0xff] }
 0x16b   :  { %1074 = vmatpush.bf16.msrb.mxu2 %v2522_v38  ;;  %1039 = vmatpush.bf16.msrb.mxu0 %v2503_v52  ;;  %v2536_v52 = vld [vmem:[%s3389_s3 + $0x118] sm:$0xff] }
 0x16c   :  { %v666_v5 = vadd.f32 %v665_v3, %v647_v2  ;;  %v693_v19 = vadd.f32 %v692_v15, %v691_v13  ;;  %v2540_v13 = vld [vmem:[%s3389_s3 + $0x138] sm:$0xff] }
 0x16d   :  { %1060 = vmatpush.bf16.msra.mxu1 %v2509_v56  ;;  %v2535_v56 = vld [vmem:[%s3389_s3 + $0x110] sm:$0xff] }
 0x16e   :  { %v3017_v8 = vadd.f32 %v684_v6, %v666_v5 }
 0x16f   :  { %1075 = vmatpush.bf16.msrb.mxu2 %v2521_v41  ;;  %1040 = vmatpush.bf16.msrb.mxu0 %v2502_v59  ;;  %v2545_v59 = vld [vmem:[%s3389_s3 + $0x160] sm:$0xff] }
 0x170   :  { %v694_v10 = vadd.f32 %v3017_v8, %v3015_v7 }
 0x171   :  { %1358 = vmatpush.bf16.msrb.mxu1 %v2548_v48 }
 0x172   :  { %v695_v11 = vrot.slane %v694_v10, 4 }
 0x173   :  { %1076 = vmatpush.bf16.msrb.mxu2 %v2520_v44  ;;  %1041 = vmatpush.bf16.msrb.mxu0 %v2501_v61  ;;  %v2530_v61 = vld [vmem:[%s3389_s3 + $0xe8] sm:$0xff] }
 0x174   :  { %v696_v12 = vadd.f32 %v695_v11, %v694_v10 }
 0x176   :  { %v697_v14 = vrot.slane %v696_v12, 2 }
 0x177   :  { %1077 = vmatpush.bf16.msrb.mxu2 %v2519_v51  ;;  %1339 = vmatpush.bf16.msra.mxu0 %v2540_v13  ;;  %v2547_v51 = vld [vmem:[%s3389_s3 + $0x170] sm:$0xff]  ;;  %v2589_v13 = vld [vmem:[%s3388_s2 + $0x1] ss:$0 sm:$0xff] }
 0x178   :  { %v698_v17 = vadd.f32 %v697_v14, %v696_v12  ;;  %1359 = vmatpush.bf16.msrb.mxu1 %v2547_v51 }
 0x17a   :  { %v699_v18 = vrot.slane %v698_v17, 1 }
 0x17b   :  { %1078 = vmatpush.bf16.msrb.mxu2 %v2518_v58  ;;  %v2531_v58 = vld [vmem:[%s3389_s3 + $0xf0] sm:$0xff] }
 0x17c   :  { %v700_v20 = vadd.f32 %v699_v18, %v698_v17  ;;  %v2539_v18 = vld [vmem:[%s3389_s3 + $0x130] sm:$0xff] }
 0x17d   :  { %1340 = vmatpush.bf16.msra.mxu0 %v2539_v18 }
 0x17e   :  { %v722_v25 = vsel %vm721_vm12, %v700_v20, %v693_v19 }
 0x17f   :  { %740 = vmatmul.f32.vlgmr.msra.gmra.mxu3 %v722_v25  ;;  %1079 = vmatpush.bf16.msrb.mxu2 %v2517_v60  ;;  %v2534_v60 = vld [vmem:[%s3389_s3 + $0x108] sm:$0xff] }
 0x202   :  { %v741_v27 = vpop.f32.mrf.mxu3 }
 0x203   :  { %v742_v28 = vadd.f32 %v2587_v26, %v741_v27 }
 0x205   :  { %v744_v29 = vmax.f32 %v742_v28, 0.0 }
 0x207   :  { %2011 = vmatmul.msk.f32.vlgmr.msrb.gmra.mxu3 %vm748_vm13, %v744_v29 }
 0x28a   :  { %v773_v50 = vpop.f32.mrf.mxu3 }
 0x28b   :  { %v774_v53 = vadd.f32 %v2588_v46, %v773_v50  ;;  %v2538_v46 = vld [vmem:[%s3389_s3 + $0x128] sm:$0xff]  ;;  %v2537_v50 = vld [vmem:[%s3389_s3 + $0x120] sm:$0xff] }
 0x28c   :  { %1341 = vmatpush.bf16.msra.mxu0 %v2538_v46 }
 0x28d   :  { %v2012_v55 = vmul.f32 -1.442695, %v774_v53  ;;  %v2532_v53 = vld [vmem:[%s3389_s3 + $0xf8] sm:$0xff] }
 0x28e   :  { %1320 = vmatpush.bf16.msra.mxu3 %v2532_v53 }
 0x28f   :  { %2594 = vpow2.f32 %v2012_v55  ;;  %v2546_v55 = vld [vmem:[%s3389_s3 + $0x168] sm:$0xff] }
 0x290   :  { %1342 = vmatpush.bf16.msra.mxu0 %v2537_v50  ;;  %1360 = vmatpush.bf16.msrb.mxu1 %v2546_v55 }
 0x292   :  { %1321 = vmatpush.bf16.msra.mxu3 %v2531_v58 }
 0x294   :  { %1343 = vmatpush.bf16.msra.mxu0 %v2536_v52  ;;  %1361 = vmatpush.bf16.msrb.mxu1 %v2545_v59 }
 0x295   :  { %v2595_v63 = vpop.eup %2594 }
 0x296   :  { %v779_v1 = vadd.f32 1.0, %v2595_v63  ;;  %v2544_v63 = vld [vmem:[%s3389_s3 + $0x158] sm:$0xff]  ;;  %1322 = vmatpush.bf16.msra.mxu3 %v2530_v61 }
 0x298   :  { %2596 = vrcp.f32 %v779_v1  ;;  %v791_v5 = vand.u32 2147483648, %v779_v1  ;;  %v789_v9 = vand.u32 2147483647, %v779_v1  ;;  %vm785_vm15 = vweird.f32 %v779_v1  ;;  %1344 = vmatpush.bf16.msra.mxu0 %v2535_v56  ;;  %1362 = vmatpush.bf16.msrb.mxu1 %v2544_v63 }
 0x29a   :  { %v792_v11 = vor.u32 1.1754944e-38, %v791_v5  ;;  %vm790_vm3 = vcmp.eq.f32.partialorder %v789_v9, 8.507059e+37  ;;  %v2542_v5 = vld [vmem:[%s3389_s3 + $0x148] sm:$0xff]  ;;  %v2541_v9 = vld [vmem:[%s3389_s3 + $0x140] sm:$0xff] }
 0x29c   :  { %1345 = vmatpush.bf16.msra.mxu0 %v2534_v60 }
 0x29e   :  { %v2597_v2 = vpop.eup %2596 }
 0x29f   :  { %v781_v3 = vmul.f32 %v2597_v2, %v779_v1  ;;  %vm786_vm14 = vweird.f32 %v2597_v2  ;;  %v2533_v1 = vld [vmem:[%s3389_s3 + $0x100] sm:$0xff] }
 0x2a0   :  { %vm787_vm2 = vmor %vm785_vm15, %vm786_vm14  ;;  %1346 = vmatpush.bf16.msra.mxu0 %v2533_v1 }
 0x2a1   :  { %v782_v4 = vsub.f32 1.0, %v781_v3  ;;  %v2543_v3 = vld [vmem:[%s3389_s3 + $0x150] sm:$0xff] }
 0x2a2   :  { %1363 = vmatpush.bf16.msrb.mxu1 %v2543_v3 }
 0x2a3   :  { %v783_v6 = vmul.f32 %v2597_v2, %v782_v4  ;;  %v2528_v4 = vld [vmem:[%s3389_s3 + $0xd8] sm:$0xff] }
 0x2a5   :  { %v784_v10 = vadd.f32 %v2597_v2, %v783_v6  ;;  %v2527_v6 = vld [vmem:[%s3389_s3 + $0xd0] sm:$0xff] }
 0x2a6   :  { %1364 = vmatpush.bf16.msrb.mxu1 %v2542_v5 }
 0x2a7   :  { %v788_v12 = vsel %vm787_vm2, %v2597_v2, %v784_v10  ;;  %v2529_v2 = vld [vmem:[%s3389_s3 + $0xe0] sm:$0xff] }
 0x2a8   :  { %v793_v14 = vsel %vm790_vm3, %v792_v11, %v788_v12  ;;  %1323 = vmatpush.bf16.msra.mxu3 %v2529_v2  ;;  %v2526_v12 = vld [vmem:[%s3389_s3 + $0xc8] sm:$0xff] }
 0x2a9   :  { %v796_v15 = vrot.slane %v793_v14, 1  ;;  %v797_v17 = vperm.slane %v793_v14, 0  ;;  %v2525_v14 = vld [vmem:[%s3389_s3 + $0xc0] sm:$0xff] }
 0x2aa   :  { %1365 = vmatpush.bf16.msrb.mxu1 %v2541_v9  ;;  %v2339_v9 = vld [vmem:[%s3391_s5 + $0xf0] sm:$0xff] }
 0x2ab   :  { %v798_v19 = vperm.slane %v796_v15, 0  ;;  %v801_v20 = vmul.f32 %v797_v17, %v3011_v57  ;;  %v802_v25 = vmul.f32 %v797_v17, %v3008_v54 }
 0x2ac   :  { %1324 = vmatpush.bf16.msra.mxu3 %v2528_v4 }
 0x2ad   :  { %v803_v26 = vmul.f32 %v798_v19, %v3015_v7  ;;  %v804_v27 = vmul.f32 %v798_v19, %v3017_v8  ;;  %v3112_v28 = vadd.f32 %v801_v20, %v2761_v21  ;;  %v3115_v29 = vadd.f32 %v802_v25, %v2766_v22 }
 0x2af   :  { %v884_v30 = vpack.c.bf16 %v3115_v29, %v3112_v28  ;;  %v3120_v31 = vadd.f32 %v804_v27, %v2771_v23  ;;  %v859_v57 = vrot.slane %v3112_v28, 7  ;;  %v860_v54 = vrot.slane %v3115_v29, 7 }
 0x2b0   :  { %v3125_v7 = vadd.f32 %v803_v26, %v2776_v24  ;;  %v871_v21 = vrot.slane %v3112_v28, 1  ;;  %v872_v8 = vrot.slane %v3115_v29, 1  ;;  %1325 = vmatpush.bf16.msra.mxu3 %v2527_v6  ;;  %v2340_v6 = vld [vmem:[%s3391_s5 + $0xf8] sm:$0xff] }
 0x2b1   :  { %1061 = vmatmul.bf16.vlgmr.msra.gmra.mxu1 %v884_v30  ;;  %v862_v22 = vrot.slane %v3120_v31, 7  ;;  %v865_v23 = vsel %vm172_vm0, %v859_v57, %v860_v54  ;;  %v874_v38 = vrot.slane %v3120_v31, 1  ;;  %1414 = vmatpush.msra.mxu2 %v2340_v6 }
 0x2b2   :  { %v873_v32 = vrot.slane %v3125_v7, 1  ;;  %v877_v35 = vsel %vm185_vm1, %v871_v21, %v872_v8  ;;  %v861_v37 = vrot.slane %v3125_v7, 7  ;;  %v887_v39 = vpack.c.bf16 %v3120_v31, %v3125_v7 }
 0x2b3   :  { %v866_v33 = vsel %vm172_vm0, %v862_v22, %v859_v57  ;;  %v878_v43 = vsel %vm185_vm1, %v874_v38, %v871_v21  ;;  %1415 = vmatpush.msra.mxu2 %v2339_v9 }
 0x2b4   :  { %v2158_v34 = vpack.c.bf16 %v865_v23, %v866_v33  ;;  %v876_v24 = vsel %vm185_vm1, %v872_v8, %v873_v32  ;;  %v863_v40 = vsel %vm172_vm0, %v861_v37, %v862_v22  ;;  %v864_v41 = vsel %vm172_vm0, %v860_v54, %v861_v37  ;;  %1326 = vmatpush.bf16.msra.mxu3 %v2526_v12  ;;  %v2336_v12 = vld [vmem:[%s3391_s5 + $0xd8] sm:$0xff] }
 0x2b5   :  { %v2164_v36 = vpack.c.bf16 %v876_v24, %v877_v35  ;;  %v875_v42 = vsel %vm185_vm1, %v873_v32, %v874_v38  ;;  %v2161_v44 = vpack.c.bf16 %v863_v40, %v864_v41 }
 0x2b6   :  { %2159 = vmatmul.msk.bf16.vlgmr.msrb.gmra.mxu0 %vm2820_vm5, %v2158_v34  ;;  %v2167_v45 = vpack.c.bf16 %v878_v43, %v875_v42 }
 0x2b7   :  { %2165 = vmatmul.msk.bf16.vlgmr.msrb.gmra.mxu2 %vm2825_vm6, %v2164_v36 }
 0x2b8   :  { %1327 = vmatpush.bf16.msra.mxu3 %v2525_v14  ;;  %v2334_v14 = vld [vmem:[%s3391_s5 + $0xc8] sm:$0xff] }
 0x2c1   :  { %1066 = vmatmul.bf16.gmra.mxu1 %v887_v39 }
 0x2c6   :  { %2162 = vmatmul.msk.bf16.gmra.mxu0 %vm2848_vm9, %v2161_v44 }
 0x2c7   :  { %2168 = vmatmul.msk.bf16.gmra.mxu2 %vm2853_vm10, %v2167_v45 }
 0x32e   :  { %v1062_v10 = vpop.f32.mrf.mxu1 }
 0x333   :  { %v1043_v11 = vpop.f32.mrf.mxu0 }
 0x334   :  { %v1044_v17 = vadd.f32 %v2589_v13, %v1043_v11  ;;  %v2337_v11 = vld [vmem:[%s3391_s5 + $0xe0] sm:$0xff] }
 0x336   :  { %v1064_v19 = vpop.f32.mrf.mxu1  ;;  %v1063_v25 = vadd.f32 %v1062_v10, %v1044_v17  ;;  %v2338_v10 = vld [vmem:[%s3391_s5 + $0xe8] sm:$0xff]  ;;  %v2333_v17 = vld [vmem:[%s3391_s5 + $0xc0] sm:$0xff] }
 0x337   :  { %1416 = vmatpush.msra.mxu2 %v2338_v10  ;;  %v2591_v10 = vld [vmem:[%s3392_s6 + $0x1] ss:$0 sm:$0xff] }
 0x339   :  { %1417 = vmatpush.msra.mxu2 %v2337_v11 }
 0x33a   :  { %v1081_v15 = vpop.f32.mrf.mxu2 }
 0x33b   :  { %v1045_v18 = vpop.f32.mrf.mxu0  ;;  %v1082_v26 = vadd.f32 %v1081_v15, %v1063_v25  ;;  %1418 = vmatpush.msra.mxu2 %v2336_v12  ;;  %v2331_v25 = vld [vmem:[%s3391_s5 + $0xb0] sm:$0xff] }
 0x33c   :  { %v1046_v20 = vadd.f32 %v2589_v13, %v1045_v18 }
 0x33d   :  { %v1091_v21 = vmax.f32 %v1082_v26, 0.0  ;;  %v2330_v26 = vld [vmem:[%s3391_s5 + $0xa8] sm:$0xff] }
 0x33e   :  { %v1065_v27 = vadd.f32 %v1064_v19, %v1046_v20  ;;  %v1067_v32 = vpop.f32.mrf.mxu1  ;;  %v2332_v19 = vld [vmem:[%s3391_s5 + $0xb8] sm:$0xff] }
 0x33f   :  { %v1157_v39 = vrot.slane %v1091_v21, 1  ;;  %v1145_v52 = vrot.slane %v1091_v21, 7 }
 0x342   :  { %v1083_v30 = vpop.f32.mrf.mxu2 }
 0x343   :  { %v1084_v57 = vadd.f32 %v1083_v30, %v1065_v27  ;;  %v1048_v54 = vpop.f32.mrf.mxu0  ;;  %v2590_v27 = vld [vmem:[%s3390_s4 + $0x1] ss:$0 sm:$0xff] }
 0x344   :  { %v1049_v22 = vadd.f32 %v2589_v13, %v1048_v54  ;;  %v2329_v30 = vld [vmem:[%s3391_s5 + $0xa0] sm:$0xff] }
 0x345   :  { %v1092_v8 = vmax.f32 %v1084_v57, 0.0  ;;  %v2328_v57 = vld [vmem:[%s3391_s5 + $0x98] sm:$0xff] }
 0x346   :  { %v1068_v33 = vadd.f32 %v1067_v32, %v1049_v22  ;;  %v1069_v41 = vpop.f32.mrf.mxu1 }
 0x347   :  { %v1170_v23 = vpack.c.bf16 %v1092_v8, %v1091_v21  ;;  %v1158_v36 = vrot.slane %v1092_v8, 1  ;;  %v1146_v50 = vrot.slane %v1092_v8, 7  ;;  %v2327_v21 = vld [vmem:[%s3391_s5 + $0x90] sm:$0xff] }
 0x349   :  { %1347 = vmatmul.bf16.vlgmr.msra.gmra.mxu0 %v1170_v23  ;;  %v1163_v42 = vsel %vm185_vm1, %v1157_v39, %v1158_v36  ;;  %v1151_v56 = vsel %vm172_vm0, %v1145_v52, %v1146_v50 }
 0x34a   :  { %v1086_v34 = vpop.f32.mrf.mxu2 }
 0x34b   :  { %v1087_v24 = vadd.f32 %v1086_v34, %v1068_v33  ;;  %v1050_v35 = vpop.f32.mrf.mxu0  ;;  %v2326_v33 = vld [vmem:[%s3391_s5 + $0x88] sm:$0xff] }
 0x34c   :  { %v1051_v38 = vadd.f32 %v2589_v13, %v1050_v35  ;;  %v2335_v13 = vld [vmem:[%s3391_s5 + $0xd0] sm:$0xff] }
 0x34d   :  { %v1093_v37 = vmax.f32 %v1087_v24, 0.0  ;;  %1419 = vmatpush.msra.mxu2 %v2335_v13  ;;  %v2325_v24 = vld [vmem:[%s3391_s5 + $0x80] sm:$0xff] }
 0x34e   :  { %v1070_v44 = vadd.f32 %v1069_v41, %v1051_v38 }
 0x34f   :  { %v1159_v40 = vrot.slane %v1093_v37, 1  ;;  %v1147_v2 = vrot.slane %v1093_v37, 7  ;;  %1420 = vmatpush.msra.mxu2 %v2334_v14  ;;  %v2564_v14 = vld [vmem:[#allocation2 + $0x78] sm:$0xff] }
 0x350   :  { %2573 = vmatpush.bf16.msra.mxu1 %v2564_v14 }
 0x351   :  { %v1162_v43 = vsel %vm185_vm1, %v1158_v36, %v1159_v40  ;;  %v1150_v4 = vsel %vm172_vm0, %v1146_v50, %v1147_v2  ;;  %1421 = vmatpush.msra.mxu2 %v2333_v17  ;;  %v2341_v36 = vld [vmem:[%s3393_s7 + $0x4] sm:$0xf]  ;;  %v2572_v17 = vld [vmem:[#allocation2 + $0xb8] sm:$0xff] }
 0x352   :  { %v2320_v45 = vpack.c.bf16 %v1162_v43, %v1163_v42  ;;  %v1088_v46 = vpop.f32.mrf.mxu2  ;;  %2342 = vmatpush.msk.msrb.mxu3 %vm752_vm11, %v2341_v36 }
 0x353   :  { %v1089_v48 = vadd.f32 %v1088_v46, %v1070_v44  ;;  %1422 = vmatpush.msra.mxu2 %v2332_v19  ;;  %v2555_v19 = vld [vmem:[#allocation2 + $0x30] sm:$0xff] }
 0x354   :  { %2321 = vmatmul.msk.bf16.vlgmr.msrb.gmra.mxu1 %vm2825_vm6, %v2320_v45 }
 0x355   :  { %v1094_v51 = vmax.f32 %v1089_v48, 0.0  ;;  %1423 = vmatpush.msra.mxu2 %v2331_v25  ;;  %v2562_v25 = vld [vmem:[#allocation2 + $0x68] sm:$0xff] }
 0x357   :  { %v1148_v53 = vrot.slane %v1094_v51, 7  ;;  %v1173_v55 = vpack.c.bf16 %v1094_v51, %v1093_v37  ;;  %v1160_v60 = vrot.slane %v1094_v51, 1  ;;  %1424 = vmatpush.msra.mxu2 %v2330_v26  ;;  %v2554_v26 = vld [vmem:[#allocation2 + $0x28] sm:$0xff] }
 0x359   :  { %v1152_v58 = vsel %vm172_vm0, %v1148_v53, %v1145_v52  ;;  %1352 = vmatmul.bf16.gmra.mxu0 %v1173_v55  ;;  %v1161_v61 = vsel %vm185_vm1, %v1159_v40, %v1160_v60  ;;  %v1164_v63 = vsel %vm185_vm1, %v1160_v60, %v1157_v39  ;;  %v1149_v3 = vsel %vm172_vm0, %v1147_v2, %v1148_v53 }
 0x35a   :  { %v2314_v59 = vpack.c.bf16 %v1151_v56, %v1152_v58  ;;  %v2323_v1 = vpack.c.bf16 %v1164_v63, %v1161_v61  ;;  %v2317_v5 = vpack.c.bf16 %v1149_v3, %v1150_v4  ;;  %1425 = vmatpush.msra.mxu2 %v2329_v30  ;;  %v2561_v30 = vld [vmem:[#allocation2 + $0x60] sm:$0xff] }
 0x35c   :  { %2315 = vmatmul.msk.bf16.vlgmr.msra.gmra.mxu3 %vm2820_vm5, %v2314_v59  ;;  %1426 = vmatpush.msra.mxu2 %v2328_v57  ;;  %v2553_v57 = vld [vmem:[#allocation2 + $0x20] sm:$0xff] }
 0x35e   :  { %1427 = vmatpush.msra.mxu2 %v2327_v21  ;;  %v2560_v21 = vld [vmem:[#allocation2 + $0x58] sm:$0xff] }
 0x360   :  { %1428 = vmatpush.msra.mxu2 %v2326_v33  ;;  %v2551_v33 = vld [vmem:[#allocation2 + $0x10] sm:$0xff] }
 0x362   :  { %1429 = vmatpush.msra.mxu2 %v2325_v24  ;;  %v2558_v24 = vld [vmem:[#allocation2 + $0x48] sm:$0xff] }
 0x364   :  { %2324 = vmatmul.msk.bf16.gmra.mxu1 %vm2853_vm10, %v2323_v1  ;;  %1762 = vmatpush.bf16.msrb.mxu2 %v2572_v17 }
 0x36c   :  { %2318 = vmatmul.msk.bf16.gmra.mxu3 %vm2848_vm9, %v2317_v5 }
 0x3c6   :  { %v1348_v15 = vpop.f32.mrf.mxu0 }
 0x3ce   :  { %v1350_v54 = vpop.f32.mrf.mxu0 }
 0x3d1   :  { %v1367_v18 = vpop.f32.mrf.mxu1 }
 0x3d6   :  { %v1353_v38 = vpop.f32.mrf.mxu0 }
 0x3d9   :  { %v1369_v8 = vpop.f32.mrf.mxu1 }
 0x3de   :  { %v1355_v50 = vpop.f32.mrf.mxu0 }
 0x3df   :  { %v1329_v20 = vpop.f32.mrf.mxu3 }
 0x3e0   :  { %v1330_v32 = vadd.f32 %v2590_v27, %v1329_v20  ;;  %v2571_v20 = vld [vmem:[#allocation2 + $0xb0] sm:$0xff] }
 0x3e1   :  { %v1372_v41 = vpop.f32.mrf.mxu1  ;;  %1763 = vmatpush.bf16.msrb.mxu2 %v2571_v20 }
 0x3e2   :  { %v1349_v35 = vadd.f32 %v1348_v15, %v1330_v32  ;;  %v2556_v15 = vld [vmem:[#allocation2 + $0x38] sm:$0xff]  ;;  %v2592_v32 = vld [vmem:[%s3394_s8 + $0x1] ss:$0 sm:$0xff] }
 0x3e3   :  { %1724 = vmatpush.bf16.msrb.mxu0 %v2556_v15 }
 0x3e4   :  { %v3309_v40 = vadd.f32 %v1367_v18, %v1349_v35  ;;  %v2563_v18 = vld [vmem:[#allocation2 + $0x70] sm:$0xff] }
 0x3e5   :  { %2574 = vmatpush.bf16.msra.mxu1 %v2563_v18 }
 0x3e7   :  { %v1331_v22 = vpop.f32.mrf.mxu3  ;;  %1725 = vmatpush.bf16.msrb.mxu0 %v2555_v19 }
 0x3e8   :  { %v1332_v23 = vadd.f32 %v2590_v27, %v1331_v22  ;;  %v2568_v22 = vld [vmem:[#allocation2 + $0x98] sm:$0xff] }
 0x3e9   :  { %v1374_v53 = vpop.f32.mrf.mxu1  ;;  %2575 = vmatpush.bf16.msra.mxu1 %v2562_v25 }
 0x3ea   :  { %v1351_v34 = vadd.f32 %v1350_v54, %v1332_v23  ;;  %v2569_v54 = vld [vmem:[#allocation2 + $0xa0] sm:$0xff]  ;;  %v2559_v23 = vld [vmem:[#allocation2 + $0x50] sm:$0xff] }
 0x3eb   :  { %1726 = vmatpush.bf16.msrb.mxu0 %v2554_v26 }
 0x3ec   :  { %v3306_v37 = vadd.f32 %v1369_v8, %v1351_v34  ;;  %v2552_v8 = vld [vmem:[#allocation2 + $0x18] sm:$0xff]  ;;  %v2567_v34 = vld [vmem:[#allocation2 + $0x90] sm:$0xff] }
 0x3ed   :  { %2576 = vmatpush.bf16.msra.mxu1 %v2561_v30 }
 0x3ee   :  { %v1377_v42 = vadd.f32 %v3306_v37, %v3309_v40 }
 0x3ef   :  { %v1334_v39 = vpop.f32.mrf.mxu3  ;;  %1727 = vmatpush.bf16.msrb.mxu0 %v2553_v57 }
 0x3f0   :  { %v1335_v43 = vadd.f32 %v2590_v27, %v1334_v39  ;;  %v1378_v44 = vrot.slane %v1377_v42, 4  ;;  %v2566_v39 = vld [vmem:[#allocation2 + $0x88] sm:$0xff] }
 0x3f1   :  { %2577 = vmatpush.bf16.msra.mxu1 %v2560_v21 }
 0x3f2   :  { %v1354_v46 = vadd.f32 %v1353_v38, %v1335_v43  ;;  %v1379_v51 = vadd.f32 %v1378_v44, %v1377_v42  ;;  %v2550_v38 = vld [vmem:[#allocation2 + $0x8] sm:$0xff]  ;;  %v2557_v42 = vld [vmem:[#allocation2 + $0x40] sm:$0xff] }
 0x3f3   :  { %1728 = vmatpush.bf16.msrb.mxu0 %v2552_v8  ;;  %v2549_v43 = vld [vmem:[#allocation2] sm:$0xff] }
 0x3f4   :  { %v3313_v55 = vadd.f32 %v1372_v41, %v1354_v46  ;;  %v1380_v58 = vrot.slane %v1379_v51, 2  ;;  %v2565_v44 = vld [vmem:[#allocation2 + $0x80] sm:$0xff] }
 0x3f5   :  { %2578 = vmatpush.bf16.msra.mxu1 %v2559_v23 }
 0x3f6   :  { %v1381_v63 = vadd.f32 %v1380_v58, %v1379_v51 }
 0x3f7   :  { %v1336_v45 = vpop.f32.mrf.mxu3  ;;  %1729 = vmatpush.bf16.msrb.mxu0 %v2551_v33 }
 0x3f8   :  { %v1337_v48 = vadd.f32 %v2590_v27, %v1336_v45  ;;  %v1382_v2 = vrot.slane %v1381_v63, 1  ;;  %v2570_v27 = vld [vmem:[#allocation2 + $0xa8] sm:$0xff] }
 0x3f9   :  { %1764 = vmatpush.bf16.msrb.mxu2 %v2570_v27  ;;  %2579 = vmatpush.bf16.msra.mxu1 %v2558_v24 }
 0x3fa   :  { %v1356_v52 = vadd.f32 %v1355_v50, %v1337_v48  ;;  %v1383_v5 = vadd.f32 %v1382_v2, %v1381_v63 }
 0x3fb   :  { %1730 = vmatpush.bf16.msrb.mxu0 %v2550_v38 }
 0x3fc   :  { %v3315_v56 = vadd.f32 %v1374_v53, %v1356_v52 }
 0x3fd   :  { %1765 = vmatpush.bf16.msrb.mxu2 %v2569_v54  ;;  %2580 = vmatpush.bf16.msra.mxu1 %v2557_v42 }
 0x3fe   :  { %v1384_v59 = vadd.f32 %v3315_v56, %v3313_v55 }
 0x3ff   :  { %1731 = vmatpush.bf16.msrb.mxu0 %v2549_v43 }
 0x400   :  { %v1385_v60 = vrot.slane %v1384_v59, 4 }
 0x401   :  { %1766 = vmatpush.bf16.msrb.mxu2 %v2568_v22 }
 0x402   :  { %v1386_v61 = vadd.f32 %v1385_v60, %v1384_v59 }
 0x403   :  { %1743 = vmatpush.bf16.msra.mxu0 %v2564_v14 }
 0x404   :  { %v1387_v1 = vrot.slane %v1386_v61, 2 }
 0x405   :  { %1767 = vmatpush.bf16.msrb.mxu2 %v2567_v34 }
 0x406   :  { %v1388_v3 = vadd.f32 %v1387_v1, %v1386_v61 }
 0x407   :  { %1744 = vmatpush.bf16.msra.mxu0 %v2563_v18 }
 0x408   :  { %v1389_v4 = vrot.slane %v1388_v3, 1 }
 0x409   :  { %1768 = vmatpush.bf16.msrb.mxu2 %v2566_v39 }
 0x40a   :  { %v1390_v6 = vadd.f32 %v1389_v4, %v1388_v3 }
 0x40b   :  { %1745 = vmatpush.bf16.msra.mxu0 %v2562_v25 }
 0x40c   :  { %v1412_v9 = vsel %vm721_vm12, %v1390_v6, %v1383_v5 }
 0x40d   :  { %1430 = vmatmul.f32.vlgmr.msra.gmra.mxu2 %v1412_v9 }
 0x40e   :  { %1769 = vmatpush.bf16.msrb.mxu2 %v2565_v44 }
 0x40f   :  { %1746 = vmatpush.bf16.msra.mxu0 %v2561_v30 }
 0x413   :  { %1747 = vmatpush.bf16.msra.mxu0 %v2560_v21 }
 0x417   :  { %1748 = vmatpush.bf16.msra.mxu0 %v2559_v23  ;;  %v2593_v23 = vld [vmem:[%s3396_s10] ss:$0 sm:$0xff] }
 0x41b   :  { %1749 = vmatpush.bf16.msra.mxu0 %v2558_v24 }
 0x41f   :  { %1750 = vmatpush.bf16.msra.mxu0 %v2557_v42 }
 0x490   :  { %v1431_v11 = vpop.f32.mrf.mxu2 }
 0x491   :  { %v1432_v12 = vadd.f32 %v2591_v10, %v1431_v11 }
 0x493   :  { %v1434_v13 = vmax.f32 %v1432_v12, 0.0 }
 0x495   :  { %2343 = vmatmul.msk.f32.vlgmr.msrb.gmra.mxu3 %vm748_vm13, %v1434_v13 }
 0x518   :  { %v1462_v35 = vpop.f32.mrf.mxu3 }
 0x519   :  { %v1463_v36 = vadd.f32 %v2592_v32, %v1462_v35 }
 0x51b   :  { %v2344_v41 = vmul.f32 -1.442695, %v1463_v36 }
 0x51d   :  { %2598 = vpow2.f32 %v2344_v41 }
 0x523   :  { %v2599_v45 = vpop.eup %2598 }
 0x524   :  { %v1468_v46 = vadd.f32 1.0, %v2599_v45 }
 0x526   :  { %2600 = vrcp.f32 %v1468_v46  ;;  %v1480_v52 = vand.u32 2147483648, %v1468_v46  ;;  %v1478_v58 = vand.u32 2147483647, %v1468_v46  ;;  %vm1474_vm7 = vweird.f32 %v1468_v46 }
 0x528   :  { %v1481_v60 = vor.u32 1.1754944e-38, %v1480_v52  ;;  %vm1479_vm11 = vcmp.eq.f32.partialorder %v1478_v58, 8.507059e+37 }
 0x52c   :  { %v2601_v48 = vpop.eup %2600 }
 0x52d   :  { %v1470_v50 = vmul.f32 %v2601_v48, %v1468_v46  ;;  %vm1475_vm4 = vweird.f32 %v2601_v48 }
 0x52e   :  { %vm1476_vm8 = vmor %vm1474_vm7, %vm1475_vm4 }
 0x52f   :  { %v1471_v51 = vsub.f32 1.0, %v1470_v50 }
 0x531   :  { %v1472_v53 = vmul.f32 %v2601_v48, %v1471_v51 }
 0x533   :  { %v1473_v59 = vadd.f32 %v2601_v48, %v1472_v53  ;;  %v2604_v53 = vld [vmem:[%s3386_s0] sm:$0xff] }
 0x535   :  { %v1477_v61 = vsel %vm1476_vm8, %v2601_v48, %v1473_v59  ;;  %v2603_v48 = vld [vmem:[%s3386_s0 + $0x18] sm:$0xff] }
 0x536   :  { %v1482_v63 = vsel %vm1479_vm11, %v1481_v60, %v1477_v61 }
 0x537   :  { %v1485_v1 = vrot.slane %v1482_v63, 1  ;;  %v1486_v2 = vperm.slane %v1482_v63, 0 }
 0x539   :  { %v1487_v3 = vperm.slane %v1485_v1, 0  ;;  %v1490_v4 = vmul.f32 %v1486_v2, %v3309_v40  ;;  %v1491_v5 = vmul.f32 %v1486_v2, %v3306_v37  ;;  %v2605_v1 = vld [vmem:[%s3386_s0 + $0x8] sm:$0xff] }
 0x53b   :  { %v1492_v6 = vmul.f32 %v1487_v3, %v3313_v55  ;;  %v1493_v9 = vmul.f32 %v1487_v3, %v3315_v56  ;;  %v1494_v10 = vadd.f32 %v1490_v4, %v3112_v28  ;;  %v1495_v11 = vadd.f32 %v1491_v5, %v3115_v29 }
 0x53d   :  { %v1496_v12 = vadd.f32 %v1492_v6, %v3125_v7  ;;  %v1497_v13 = vadd.f32 %v1493_v9, %v3120_v31  ;;  %v1547_v14 = vrot.slane %v1494_v10, 7  ;;  %v1548_v15 = vrot.slane %v1495_v11, 7 }
 0x53e   :  { %v1559_v17 = vrot.slane %v1494_v10, 1  ;;  %v1560_v18 = vrot.slane %v1495_v11, 1  ;;  %v1572_v49 = vpack.c.bf16 %v1495_v11, %v1494_v10 }
 0x53f   :  { %v1550_v40 = vrot.slane %v1497_v13, 7  ;;  %v1561_v19 = vrot.slane %v1496_v12, 1  ;;  %v1575_v37 = vpack.c.bf16 %v1497_v13, %v1496_v12  ;;  %v1553_v55 = vsel %vm172_vm0, %v1547_v14, %v1548_v15 }
 0x540   :  { %v1565_v31 = vsel %vm185_vm1, %v1559_v17, %v1560_v18  ;;  %v1549_v20 = vrot.slane %v1496_v12, 7  ;;  %v1562_v25 = vrot.slane %v1497_v13, 1 }
 0x541   :  { %1756 = vmatmul.bf16.vlgmr.msra.gmra.mxu1 %v1575_v37  ;;  %v1554_v28 = vsel %vm172_vm0, %v1550_v40, %v1547_v14  ;;  %v1564_v29 = vsel %vm185_vm1, %v1560_v18, %v1561_v19 }
 0x542   :  { %v2442_v7 = vpack.c.bf16 %v1553_v55, %v1554_v28  ;;  %v2448_v56 = vpack.c.bf16 %v1564_v29, %v1565_v31  ;;  %v1551_v26 = vsel %vm172_vm0, %v1549_v20, %v1550_v40  ;;  %v1552_v27 = vsel %vm172_vm0, %v1548_v15, %v1549_v20 }
 0x543   :  { %v1563_v30 = vsel %vm185_vm1, %v1561_v19, %v1562_v25  ;;  %v1566_v57 = vsel %vm185_vm1, %v1562_v25, %v1559_v17  ;;  %v2445_v54 = vpack.c.bf16 %v1551_v26, %v1552_v27 }
 0x544   :  { %2443 = vmatmul.msk.bf16.vlgmr.msrb.gmra.mxu0 %vm2820_vm5, %v2442_v7  ;;  %2449 = vmatmul.msk.bf16.vlgmr.msrb.gmra.mxu2 %vm2825_vm6, %v2448_v56  ;;  %v2451_v47 = vpack.c.bf16 %v1566_v57, %v1563_v30 }
 0x554   :  { %2446 = vmatmul.msk.bf16.gmra.mxu0 %vm2848_vm9, %v2445_v54  ;;  %2452 = vmatmul.msk.bf16.gmra.mxu2 %vm2853_vm10, %v2451_v47 }
 0x564   :  { %1751 = vmatmul.bf16.vlgmr.msra.gmra.mxu0 %v1572_v49 }
 0x5be   :  { %v1757_v34 = vpop.f32.mrf.mxu1 }
 0x5c1   :  { %v1733_v21 = vpop.f32.mrf.mxu0 }
 0x5c2   :  { %v1734_v44 = vadd.f32 %v2593_v23, %v1733_v21 }
 0x5c6   :  { %v1759_v41 = vpop.f32.mrf.mxu1 }
 0x5c7   :  { %v1771_v8 = vpop.f32.mrf.mxu2 }
 0x5c9   :  { %v1735_v22 = vpop.f32.mrf.mxu0 }
 0x5ca   :  { %v1736_v59 = vadd.f32 %v2593_v23, %v1735_v22 }
 0x5cf   :  { %v1773_v32 = vpop.f32.mrf.mxu2 }
 0x5d1   :  { %v1738_v16 = vpop.f32.mrf.mxu0 }
 0x5d2   :  { %v1739_v33 = vadd.f32 %v2593_v23, %v1738_v16 }
 0x5d4   :  { %v1758_v24 = vadd.f32 %v1757_v34, %v1739_v33 }
 0x5d7   :  { %v1776_v35 = vpop.f32.mrf.mxu2 }
 0x5d8   :  { %v1777_v62 = vadd.f32 %v1776_v35, %v1758_v24 }
 0x5d9   :  { %v1740_v36 = vpop.f32.mrf.mxu0 }
 0x5da   :  { %v1783_v38 = vadd.f32 %v2602_v0, %v1777_v62  ;;  %v1741_v39 = vadd.f32 %v2593_v23, %v1740_v36 }
 0x5dc   :  { %1787 = vst [vmem:[%s3397_s11 + $0x10] sm:$0xff] %v1783_v38  ;;  %v1760_v42 = vadd.f32 %v1759_v41, %v1741_v39 }
 0x5df   :  { %v1778_v43 = vpop.f32.mrf.mxu2 }
 0x5e0   :  { %v1779_v45 = vadd.f32 %v1778_v43, %v1760_v42 }
 0x5e1   :  { %v1752_v46 = vpop.f32.mrf.mxu0 }
 0x5e2   :  { %v1784_v50 = vadd.f32 %v2603_v48, %v1779_v45  ;;  %v1753_v51 = vadd.f32 %v1752_v46, %v1734_v44 }
 0x5e4   :  { %1788 = vst [vmem:[%s3397_s11 + $0x18] sm:$0xff] %v1784_v50  ;;  %v1772_v52 = vadd.f32 %v1771_v8, %v1753_v51 }
 0x5e6   :  { %v1781_v58 = vadd.f32 %v2604_v53, %v1772_v52 }
 0x5e8   :  { %1785 = vst [vmem:[%s3397_s11] sm:$0xff] %v1781_v58 }
 0x5e9   :  { %v1754_v60 = vpop.f32.mrf.mxu0 }
 0x5ea   :  { %v1755_v61 = vadd.f32 %v1754_v60, %v1736_v59 }
 0x5ec   :  { %v1774_v63 = vadd.f32 %v1773_v32, %v1755_v61 }
 0x5ee   :  { %v1782_v2 = vadd.f32 %v2605_v1, %v1774_v63 }
 0x5f0   :  { %1786 = vst [vmem:[%s3397_s11 + $0x8] sm:$0xff] %v1782_v2 }
 0x5f1   :  { %1793 = vsyncpa [#allocation3], 1 }

</bundles_post_ra>
